<compile_context>
chip_gen: v5e
topology: v5e:2x2
jax: 0.10.0
libtpu: 0.0.40
codegen_flags: <defaults>
</compile_context>

<pallas_src>
import functools

import jax
import jax.numpy as jnp
from jax import lax
from jax.experimental import pallas as pl
from jax.experimental.pallas import tpu as pltpu


# -----------------------------------------------------------------------------
# Pallas kernels
# -----------------------------------------------------------------------------
def _lstm_linear_kernel(x_ref, wih_ref, whh_ref, b_ref, wlin_ref, blin_ref,
                        out_ref, xg_ref, hs_ref):
    """Single-layer unidirectional LSTM fused with the output Linear.

    x_ref   : [T, BB_T, N]   time-major input block (BB_T independent seqs)
    wih_ref : [N, 4H]        (PyTorch weight_ih_l0, transposed)
    whh_ref : [H, 4H]        (PyTorch weight_hh_l0, transposed)
    b_ref   : [1, 4H]        (bias_ih + bias_hh)
    wlin_ref: [H, N]         (Linear weight, transposed)
    blin_ref: [1, N]
    out_ref : [T, BB_T, N]   Linear(LSTM(x)) per time step
    xg_ref  : VMEM scratch [T, BB_T, 4H]  precomputed input-gate projections
    hs_ref  : VMEM scratch [T, BB_T, H]   hidden-state history
    """
    T, BB, N = x_ref.shape
    H = whh_ref.shape[0]          # static (block shape), never a tracer

    # Hoist all weight / bias loads out of the recurrence.
    wih = wih_ref[...]
    whh = whh_ref[...]
    bias = b_ref[...]

    # (1) Input projection for every timestep as ONE batched matmul
    #     [T*BB, N] @ [N, 4H]: off the serial path, MXU-friendly M dim.
    xg = jnp.dot(x_ref[...].reshape(T * BB, N), wih,
                 preferred_element_type=jnp.float32) + bias
    xg_ref[...] = xg.reshape(T, BB, 4 * H)

    # (2) Recurrence: only h @ W_hh and the gate nonlinearities stay serial.
    # TODO(synk): gate slices are H-granular (not 128-lane aligned for H<128);
    # pad H per gate for large-H production configs.
    h0 = jnp.zeros((BB, H), jnp.float32)
    c0 = jnp.zeros((BB, H), jnp.float32)

    def step(t, carry):
        h, c = carry
        gates = xg_ref[t] + jnp.dot(h, whh, preferred_element_type=jnp.float32)
        i_g = jax.nn.sigmoid(gates[:, 0:H])
        f_g = jax.nn.sigmoid(gates[:, H:2 * H])
        g_g = jnp.tanh(gates[:, 2 * H:3 * H])
        o_g = jax.nn.sigmoid(gates[:, 3 * H:4 * H])
        c_new = f_g * c + i_g * g_g
        h_new = o_g * jnp.tanh(c_new)
        hs_ref[t] = h_new
        return h_new, c_new

    # Unroll so the LLO scheduler can overlap EUP (sigmoid/tanh) of one step
    # with MXU/VPU work of the next.
    unroll = True if T <= 16 else 2
    lax.fori_loop(0, T, step, (h0, c0), unroll=unroll)

    # (3) Output Linear hoisted out of the loop: one batched matmul and one
    #     large lane-friendly store.
    y = jnp.dot(hs_ref[...].reshape(T * BB, H), wlin_ref[...],
                preferred_element_type=jnp.float32) + blin_ref[...]
    out_ref[...] = y.reshape(T, BB, N).astype(out_ref.dtype)


def _gn_residual_kernel(y_ref, r_ref, gamma_ref, beta_ref, out_ref, *, eps):
    """GroupNorm(num_groups=1, eps) over all non-batch dims + residual add.

    y_ref, r_ref, out_ref : [T, 1, D, N]  (one batch element, time-major,
                                           channel = last dim)
    gamma_ref, beta_ref   : [1, N]
    """
    y = y_ref[...].astype(jnp.float32)
    mean = jnp.mean(y)
    var = jnp.mean((y - mean) ** 2)
    inv = lax.rsqrt(var + eps)
    out = (y - mean) * inv * gamma_ref[...] + beta_ref[...] \
        + r_ref[...].astype(jnp.float32)
    out_ref[...] = out.astype(out_ref.dtype)


# -----------------------------------------------------------------------------
# Wrappers (glue: tiling choice / pallas_call plumbing)
# -----------------------------------------------------------------------------
def _pick_bb_tile(bb, t, n, h, budget_bytes=24 * 1024 * 1024):
    """Largest sequence tile that divides BB and keeps the per-block VMEM
    working set (double-buffered in/out + xg/hs scratch) under budget."""
    divisors = [c for c in (512, 256, 128, 64, 32, 16, 8) if bb % c == 0]
    if not divisors:
        return bb                       # tiny / odd BB: single block
    for cand in divisors:               # descending: prefer the largest fit
        vmem = 4 * (2 * 2 * cand * t * n + cand * t * 5 * h)
        if vmem <= budget_bytes:
            return cand
    return divisors[-1]                 # nothing fits comfortably: smallest


def lstm_linear(x_tm, wih_t, whh_t, b, wlin_t, blin):
    """x_tm: [T, BB, N] time-major sequences -> Linear(LSTM(x_tm)), same shape."""
    T, BB, N = x_tm.shape
    H = whh_t.shape[0]                  # static python int (array shape)
    BB_T = _pick_bb_tile(BB, T, N, H)
    grid = (BB // BB_T,)

    return pl.pallas_call(
        _lstm_linear_kernel,
        out_shape=jax.ShapeDtypeStruct((T, BB, N), jnp.float32),
        grid=grid,
        in_specs=[
            pl.BlockSpec((T, BB_T, N), lambda i: (0, i, 0)),
            pl.BlockSpec((N, 4 * H), lambda i: (0, 0)),   # weights stay resident
            pl.BlockSpec((H, 4 * H), lambda i: (0, 0)),
            pl.BlockSpec((1, 4 * H), lambda i: (0, 0)),
            pl.BlockSpec((H, N), lambda i: (0, 0)),
            pl.BlockSpec((1, N), lambda i: (0, 0)),
        ],
        out_specs=pl.BlockSpec((T, BB_T, N), lambda i: (0, i, 0)),
        scratch_shapes=[
            pltpu.VMEM((T, BB_T, 4 * H), jnp.float32),    # xg
            pltpu.VMEM((T, BB_T, H), jnp.float32),        # hidden history
        ],
        compiler_params=pltpu.CompilerParams(
            dimension_semantics=("parallel",)),
    )(x_tm, wih_t, whh_t, b, wlin_t, blin)


def gn_residual(y, r, gamma, beta, eps=1e-8):
    """y, r: [T, B, D, N] time-major channels-last. GroupNorm(1, N, eps) over
    the (T, D, N) dims of each batch element, affine per channel N, then + r."""
    T, B, D, N = y.shape
    kernel = functools.partial(_gn_residual_kernel, eps=eps)
    return pl.pallas_call(
        kernel,
        out_shape=jax.ShapeDtypeStruct((T, B, D, N), jnp.float32),
        grid=(B,),
        in_specs=[
            pl.BlockSpec((T, 1, D, N), lambda b: (0, b, 0, 0)),
            pl.BlockSpec((T, 1, D, N), lambda b: (0, b, 0, 0)),
            pl.BlockSpec((1, N), lambda b: (0, 0)),
            pl.BlockSpec((1, N), lambda b: (0, 0)),
        ],
        out_specs=pl.BlockSpec((T, 1, D, N), lambda b: (0, b, 0, 0)),
        compiler_params=pltpu.CompilerParams(
            dimension_semantics=("parallel",)),
    )(y, r, gamma, beta)


def dual_rnn_block(x, p):
    """x: [B, N, K, S] -> out: [B, N, K, S] (matches PyTorch DualRNNBlock.forward)."""
    B, N, K, S = x.shape

    # ---- intra path: sequences along K, batch of B*S chunks (time-major) ----
    intra_in = jnp.transpose(x, (2, 0, 3, 1))          # [K, B, S, N]
    intra_seq = intra_in.reshape(K, B * S, N)
    intra_y = lstm_linear(intra_seq, p["intra_wih_t"], p["intra_whh_t"],
                          p["intra_b"], p["intra_wlin_t"], p["intra_blin"])
    intra_y = intra_y.reshape(K, B, S, N)
    intra_out = gn_residual(intra_y, intra_in,
                            p["intra_gamma"], p["intra_beta"])   # [K, B, S, N]

    # ---- inter path: sequences along S, batch of B*K chunks (time-major) ----
    inter_in = jnp.transpose(intra_out, (2, 1, 0, 3))  # [S, B, K, N]
    inter_seq = inter_in.reshape(S, B * K, N)
    inter_y = lstm_linear(inter_seq, p["inter_wih_t"], p["inter_whh_t"],
                          p["inter_b"], p["inter_wlin_t"], p["inter_blin"])
    inter_y = inter_y.reshape(S, B, K, N)
    inter_out = gn_residual(inter_y, inter_in,
                            p["inter_gamma"], p["inter_beta"])   # [S, B, K, N]

    # back to PyTorch layout [B, N, K, S]
    return jnp.transpose(inter_out, (1, 3, 2, 0))


# -----------------------------------------------------------------------------
# Pure-JAX reference (mirrors the PyTorch forward) for a correctness check
# -----------------------------------------------------------------------------
def _lstm_ref(seq, wih_t, whh_t, b):
    BB, T, _ = seq.shape
    H = whh_t.shape[0]

    def step(carry, xt):
        h, c = carry
        gates = xt @ wih_t + h @ whh_t + b[0]
        i, f, g, o = jnp.split(gates, 4, axis=-1)
        i, f, o = jax.nn.sigmoid(i), jax.nn.sigmoid(f), jax.nn.sigmoid(o)
        g = jnp.tanh(g)
        c = f * c + i * g
        h = o * jnp.tanh(c)
        return (h, c), h

    init = (jnp.zeros((BB, H), jnp.float32), jnp.zeros((BB, H), jnp.float32))
    _, hs = lax.scan(step, init, jnp.transpose(seq, (1, 0, 2)))
    return jnp.transpose(hs, (1, 0, 2))


def _gn_ref(z, gamma, beta, eps=1e-8):
    mean = jnp.mean(z, axis=(1, 2, 3), keepdims=True)
    var = jnp.mean((z - mean) ** 2, axis=(1, 2, 3), keepdims=True)
    return (z - mean) / jnp.sqrt(var + eps) * gamma[None, :, None, None] \
        + beta[None, :, None, None]


def ref_forward(x, p):
    B, N, K, S = x.shape
    intra = jnp.transpose(x, (0, 3, 2, 1)).reshape(B * S, K, N)
    intra = _lstm_ref(intra, p["intra_wih_t"], p["intra_whh_t"], p["intra_b"])
    intra = intra @ p["intra_wlin_t"] + p["intra_blin"][0]
    intra = jnp.transpose(intra.reshape(B, S, K, N), (0, 3, 2, 1))
    intra = _gn_ref(intra, p["intra_gamma"][0], p["intra_beta"][0]) + x

    inter = jnp.transpose(intra, (0, 2, 3, 1)).reshape(B * K, S, N)
    inter = _lstm_ref(inter, p["inter_wih_t"], p["inter_whh_t"], p["inter_b"])
    inter = inter @ p["inter_wlin_t"] + p["inter_blin"][0]
    inter = jnp.transpose(inter.reshape(B, K, S, N), (0, 3, 1, 2))
    inter = _gn_ref(inter, p["inter_gamma"][0], p["inter_beta"][0]) + intra
    return inter


# -----------------------------------------------------------------------------
# Deterministic parameter init (shapes from DualRNNBlock.__init__)
# -----------------------------------------------------------------------------
def make_params(key, out_channels, hidden_channels):
    N, H = out_channels, hidden_channels
    scale = 1.0 / jnp.sqrt(H)
    ks = jax.random.split(key, 12)

    def u(k, shape):
        return jax.random.uniform(k, shape, jnp.float32, -scale, scale)

    p = {}
    for i, name in enumerate(("intra", "inter")):
        o = i * 6
        wih = u(ks[o + 0], (4 * H, N))
        whh = u(ks[o + 1], (4 * H, H))
        bih = u(ks[o + 2], (4 * H,))
        bhh = u(ks[o + 3], (4 * H,))
        wlin = u(ks[o + 4], (N, H))
        blin = u(ks[o + 5], (N,))
        p[f"{name}_wih_t"] = wih.T                        # [N, 4H]
        p[f"{name}_whh_t"] = whh.T                        # [H, 4H]
        p[f"{name}_b"] = (bih + bhh)[None, :]             # [1, 4H]
        p[f"{name}_wlin_t"] = wlin.T                      # [H, N]
        p[f"{name}_blin"] = blin[None, :]                 # [1, N]
        p[f"{name}_gamma"] = jnp.ones((1, N), jnp.float32)
        p[f"{name}_beta"] = jnp.zeros((1, N), jnp.float32)
    return p


# -----------------------------------------------------------------------------
if __name__ == "__main__":
    B, N, K, S = 2, 16, 8, 8      # x: [B, N, K, S]
    H = 32                        # hidden_channels

    key = jax.random.PRNGKey(0)
    kx, kp = jax.random.split(key)
    x = jax.random.normal(kx, (B, N, K, S), jnp.float32)
    params = make_params(kp, out_channels=N, hidden_channels=H)

    out = jax.jit(dual_rnn_block)(x, params)
    out = jax.block_until_ready(out)

    ref = ref_forward(x, params)
    assert out.shape == (B, N, K, S)
    max_diff = jnp.max(jnp.abs(out - ref))
    assert jnp.allclose(out, ref, atol=1e-3, rtol=1e-3), \
        f"max abs diff = {max_diff}"

    print("KERNEL_OK")
</pallas_src>

<mosaic_0001>
module attributes {stable_mosaic.version = 11 : i64} {
  func.func @_gn_residual_kernel(%arg0: i32, %arg1: memref<8x1x8x16xf32, #tpu.memory_space<vmem>>, %arg2: memref<8x1x8x16xf32, #tpu.memory_space<vmem>>, %arg3: memref<1x16xf32, #tpu.memory_space<vmem>>, %arg4: memref<1x16xf32, #tpu.memory_space<vmem>>, %arg5: memref<8x1x8x16xf32, #tpu.memory_space<vmem>>) attributes {dimension_semantics = [#tpu.dimension_semantics<parallel>], iteration_bounds = array<i64: 2>, scalar_prefetch = 0 : i64, scratch_operands = 0 : i64, tpu.core_type = #tpu.core_type<tc>, window_params = [{transform_indices = @transform_0, window_bounds = array<i64: 8, 1, 8, 16>}, {transform_indices = @transform_1, window_bounds = array<i64: 8, 1, 8, 16>}, {pipeline_mode = #tpu.pipeline_mode<synchronous>, transform_indices = @transform_2, window_bounds = array<i64: 1, 16>}, {pipeline_mode = #tpu.pipeline_mode<synchronous>, transform_indices = @transform_3, window_bounds = array<i64: 1, 16>}, {transform_indices = @transform_4, window_bounds = array<i64: 8, 1, 8, 16>}]} {
    %c0 = arith.constant 0 : index
    %c0_0 = arith.constant 0 : index
    %c0_1 = arith.constant 0 : index
    %c0_2 = arith.constant 0 : index
    %0 = vector.load %arg1[%c0, %c0_0, %c0_1, %c0_2] : memref<8x1x8x16xf32, #tpu.memory_space<vmem>>, vector<8x1x8x16xf32>
    %1 = vector.shape_cast %0 : vector<8x1x8x16xf32> to vector<1x8x1x8x16xf32>
    %cst = arith.constant dense<0.000000e+00> : vector<1xf32>
    %2 = vector.multi_reduction <add>, %1, %cst [1, 2, 3, 4] : vector<1x8x1x8x16xf32> to vector<1xf32>
    %3 = vector.shape_cast %2 : vector<1xf32> to vector<1x1x1x1x1xf32>
    %4 = vector.extract %3[0, 0, 0, 0, 0] : f32 from vector<1x1x1x1x1xf32>
    %cst_3 = arith.constant 1.024000e+03 : f32
    %5 = arith.divf %4, %cst_3 : f32
    %6 = vector.broadcast %5 : f32 to vector<8x1x8x16xf32>
    %7 = arith.subf %0, %6 : vector<8x1x8x16xf32>
    %8 = arith.mulf %7, %7 : vector<8x1x8x16xf32>
    %9 = vector.shape_cast %8 : vector<8x1x8x16xf32> to vector<1x8x1x8x16xf32>
    %cst_4 = arith.constant dense<0.000000e+00> : vector<1xf32>
    %10 = vector.multi_reduction <add>, %9, %cst_4 [1, 2, 3, 4] : vector<1x8x1x8x16xf32> to vector<1xf32>
    %11 = vector.shape_cast %10 : vector<1xf32> to vector<1x1x1x1x1xf32>
    %12 = vector.extract %11[0, 0, 0, 0, 0] : f32 from vector<1x1x1x1x1xf32>
    %cst_5 = arith.constant 1.024000e+03 : f32
    %13 = arith.divf %12, %cst_5 : f32
    %cst_6 = arith.constant 9.99999993E-9 : f32
    %14 = arith.addf %13, %cst_6 : f32
    %15 = math.rsqrt %14 : f32
    %16 = vector.broadcast %5 : f32 to vector<8x1x8x16xf32>
    %17 = arith.subf %0, %16 : vector<8x1x8x16xf32>
    %18 = vector.broadcast %15 : f32 to vector<8x1x8x16xf32>
    %19 = arith.mulf %17, %18 : vector<8x1x8x16xf32>
    %c0_7 = arith.constant 0 : index
    %c0_8 = arith.constant 0 : index
    %20 = vector.load %arg3[%c0_7, %c0_8] : memref<1x16xf32, #tpu.memory_space<vmem>>, vector<1x16xf32>
    %21 = vector.shape_cast %20 : vector<1x16xf32> to vector<1x1x1x16xf32>
    %22 = vector.broadcast %21 : vector<1x1x1x16xf32> to vector<8x1x8x16xf32>
    %23 = arith.mulf %19, %22 : vector<8x1x8x16xf32>
    %c0_9 = arith.constant 0 : index
    %c0_10 = arith.constant 0 : index
    %24 = vector.load %arg4[%c0_9, %c0_10] : memref<1x16xf32, #tpu.memory_space<vmem>>, vector<1x16xf32>
    %25 = vector.shape_cast %24 : vector<1x16xf32> to vector<1x1x1x16xf32>
    %26 = vector.broadcast %25 : vector<1x1x1x16xf32> to vector<8x1x8x16xf32>
    %27 = arith.addf %23, %26 : vector<8x1x8x16xf32>
    %c0_11 = arith.constant 0 : index
    %c0_12 = arith.constant 0 : index
    %c0_13 = arith.constant 0 : index
    %c0_14 = arith.constant 0 : index
    %28 = vector.load %arg2[%c0_11, %c0_12, %c0_13, %c0_14] : memref<8x1x8x16xf32, #tpu.memory_space<vmem>>, vector<8x1x8x16xf32>
    %29 = arith.addf %27, %28 : vector<8x1x8x16xf32>
    %c0_15 = arith.constant 0 : index
    %c0_16 = arith.constant 0 : index
    %c0_17 = arith.constant 0 : index
    %c0_18 = arith.constant 0 : index
    %30 = vector.load %arg5[%c0_15, %c0_16, %c0_17, %c0_18] : memref<8x1x8x16xf32, #tpu.memory_space<vmem>>, vector<8x1x8x16xf32>
    tpu.vector_store %arg5[%c0_15, %c0_16, %c0_17, %c0_18], %29 {strides = array<i32>} : memref<8x1x8x16xf32, #tpu.memory_space<vmem>>, vector<8x1x8x16xf32>,
    return
  }
  func.func @transform_0(%arg0: i32) -> (i32, i32, i32, i32) {
    %c0_i32 = arith.constant 0 : i32
    %c0_i32_0 = arith.constant 0 : i32
    %c0_i32_1 = arith.constant 0 : i32
    %c0_i32_2 = arith.constant 0 : i32
    return %c0_i32, %arg0, %c0_i32_0, %c0_i32_1 : i32, i32, i32, i32
  }
  func.func @transform_1(%arg0: i32) -> (i32, i32, i32, i32) {
    %c0_i32 = arith.constant 0 : i32
    %c0_i32_0 = arith.constant 0 : i32
    %c0_i32_1 = arith.constant 0 : i32
    %c0_i32_2 = arith.constant 0 : i32
    return %c0_i32, %arg0, %c0_i32_0, %c0_i32_1 : i32, i32, i32, i32
  }
  func.func @transform_2(%arg0: i32) -> (i32, i32) {
    %c0_i32 = arith.constant 0 : i32
    %c0_i32_0 = arith.constant 0 : i32
    %c0_i32_1 = arith.constant 0 : i32
    return %c0_i32, %c0_i32_0 : i32, i32
  }
  func.func @transform_3(%arg0: i32) -> (i32, i32) {
    %c0_i32 = arith.constant 0 : i32
    %c0_i32_0 = arith.constant 0 : i32
    %c0_i32_1 = arith.constant 0 : i32
    return %c0_i32, %c0_i32_0 : i32, i32
  }
  func.func @transform_4(%arg0: i32) -> (i32, i32, i32, i32) {
    %c0_i32 = arith.constant 0 : i32
    %c0_i32_0 = arith.constant 0 : i32
    %c0_i32_1 = arith.constant 0 : i32
    %c0_i32_2 = arith.constant 0 : i32
    return %c0_i32, %arg0, %c0_i32_0, %c0_i32_1 : i32, i32, i32, i32
  }
}

module attributes {stable_mosaic.version = 11 : i64} {
  func.func @_lstm_linear_kernel(%arg0: i32, %arg1: memref<8x16x16xf32, #tpu.memory_space<vmem>>, %arg2: memref<16x128xf32, #tpu.memory_space<vmem>>, %arg3: memref<32x128xf32, #tpu.memory_space<vmem>>, %arg4: memref<1x128xf32, #tpu.memory_space<vmem>>, %arg5: memref<32x16xf32, #tpu.memory_space<vmem>>, %arg6: memref<1x16xf32, #tpu.memory_space<vmem>>, %arg7: memref<8x16x16xf32, #tpu.memory_space<vmem>>, %arg8: memref<8x16x128xf32, #tpu.memory_space<vmem>>, %arg9: memref<8x16x32xf32, #tpu.memory_space<vmem>>) attributes {dimension_semantics = [#tpu.dimension_semantics<parallel>], iteration_bounds = array<i64: 1>, scalar_prefetch = 0 : i64, scratch_operands = 2 : i64, tpu.core_type = #tpu.core_type<tc>, window_params = [{transform_indices = @transform_0, window_bounds = array<i64: 8, 16, 16>}, {pipeline_mode = #tpu.pipeline_mode<synchronous>, transform_indices = @transform_1, window_bounds = array<i64: 16, 128>}, {pipeline_mode = #tpu.pipeline_mode<synchronous>, transform_indices = @transform_2, window_bounds = array<i64: 32, 128>}, {pipeline_mode = #tpu.pipeline_mode<synchronous>, transform_indices = @transform_3, window_bounds = array<i64: 1, 128>}, {pipeline_mode = #tpu.pipeline_mode<synchronous>, transform_indices = @transform_4, window_bounds = array<i64: 32, 16>}, {pipeline_mode = #tpu.pipeline_mode<synchronous>, transform_indices = @transform_5, window_bounds = array<i64: 1, 16>}, {transform_indices = @transform_6, window_bounds = array<i64: 8, 16, 16>}]} {
    %c0 = arith.constant 0 : index
    %c0_0 = arith.constant 0 : index
    %0 = vector.load %arg2[%c0, %c0_0] : memref<16x128xf32, #tpu.memory_space<vmem>>, vector<16x128xf32>
    %c0_1 = arith.constant 0 : index
    %c0_2 = arith.constant 0 : index
    %1 = vector.load %arg3[%c0_1, %c0_2] : memref<32x128xf32, #tpu.memory_space<vmem>>, vector<32x128xf32>
    %c0_3 = arith.constant 0 : index
    %c0_4 = arith.constant 0 : index
    %2 = vector.load %arg4[%c0_3, %c0_4] : memref<1x128xf32, #tpu.memory_space<vmem>>, vector<1x128xf32>
    %c0_5 = arith.constant 0 : index
    %c0_6 = arith.constant 0 : index
    %c0_7 = arith.constant 0 : index
    %3 = vector.load %arg1[%c0_5, %c0_6, %c0_7] : memref<8x16x16xf32, #tpu.memory_space<vmem>>, vector<8x16x16xf32>
    %4 = vector.shape_cast %3 : vector<8x16x16xf32> to vector<128x16xf32>
    %cst = arith.constant dense<0.000000e+00> : vector<128x128xf32>
    %5 = tpu.matmul %4, %0, %cst {dimension_numbers = #tpu.dot_dimension_numbers<[1], [0], [0], [1], [0, 0, 1, 1], [], []>} : vector<128x16xf32>, vector<16x128xf32>, vector<128x128xf32> -> vector<128x128xf32>
    %6 = vector.broadcast %2 : vector<1x128xf32> to vector<128x128xf32>
    %7 = arith.addf %5, %6 : vector<128x128xf32>
    %8 = vector.shape_cast %7 : vector<128x128xf32> to vector<8x16x128xf32>
    %c0_8 = arith.constant 0 : index
    %c0_9 = arith.constant 0 : index
    %c0_10 = arith.constant 0 : index
    %9 = vector.load %arg8[%c0_8, %c0_9, %c0_10] : memref<8x16x128xf32, #tpu.memory_space<vmem>>, vector<8x16x128xf32>
    tpu.vector_store %arg8[%c0_8, %c0_9, %c0_10], %8 {strides = array<i32>} : memref<8x16x128xf32, #tpu.memory_space<vmem>>, vector<8x16x128xf32>,
    %cst_11 = arith.constant 0.000000e+00 : f32
    %10 = vector.broadcast %cst_11 : f32 to vector<16x32xf32>
    %cst_12 = arith.constant 0.000000e+00 : f32
    %11 = vector.broadcast %cst_12 : f32 to vector<16x32xf32>
    %c0_i32 = arith.constant 0 : i32
    %12 = arith.index_cast %c0_i32 : i32 to index
    %c0_13 = arith.constant 0 : index
    %c0_14 = arith.constant 0 : index
    %13 = vector.load %arg8[%12, %c0_13, %c0_14] : memref<8x16x128xf32, #tpu.memory_space<vmem>>, vector<1x16x128xf32>
    %14 = vector.shape_cast %13 : vector<1x16x128xf32> to vector<16x128xf32>
    %cst_15 = arith.constant dense<0.000000e+00> : vector<16x128xf32>
    %15 = tpu.matmul %10, %1, %cst_15 {dimension_numbers = #tpu.dot_dimension_numbers<[1], [0], [0], [1], [0, 0, 1, 1], [], []>} : vector<16x32xf32>, vector<32x128xf32>, vector<16x128xf32> -> vector<16x128xf32>
    %16 = arith.addf %14, %15 : vector<16x128xf32>
    %17 = vector.extract_strided_slice %16 {offsets = [0, 0], sizes = [16, 32], strides = [1, 1]} : vector<16x128xf32> to vector<16x32xf32>
    %18 = arith.negf %17 : vector<16x32xf32>
    %19 = math.exp %18 : vector<16x32xf32>
    %cst_16 = arith.constant 1.000000e+00 : f32
    %20 = vector.broadcast %cst_16 : f32 to vector<16x32xf32>
    %21 = arith.addf %20, %19 : vector<16x32xf32>
    %22 = arith.divf %20, %21 : vector<16x32xf32>
    %23 = vector.extract_strided_slice %16 {offsets = [0, 32], sizes = [16, 32], strides = [1, 1]} : vector<16x128xf32> to vector<16x32xf32>
    %24 = arith.negf %23 : vector<16x32xf32>
    %25 = math.exp %24 : vector<16x32xf32>
    %cst_17 = arith.constant 1.000000e+00 : f32
    %26 = vector.broadcast %cst_17 : f32 to vector<16x32xf32>
    %27 = arith.addf %26, %25 : vector<16x32xf32>
    %28 = arith.divf %26, %27 : vector<16x32xf32>
    %29 = vector.extract_strided_slice %16 {offsets = [0, 64], sizes = [16, 32], strides = [1, 1]} : vector<16x128xf32> to vector<16x32xf32>
    %30 = math.tanh %29 : vector<16x32xf32>
    %31 = vector.extract_strided_slice %16 {offsets = [0, 96], sizes = [16, 32], strides = [1, 1]} : vector<16x128xf32> to vector<16x32xf32>
    %32 = arith.negf %31 : vector<16x32xf32>
    %33 = math.exp %32 : vector<16x32xf32>
    %cst_18 = arith.constant 1.000000e+00 : f32
    %34 = vector.broadcast %cst_18 : f32 to vector<16x32xf32>
    %35 = arith.addf %34, %33 : vector<16x32xf32>
    %36 = arith.divf %34, %35 : vector<16x32xf32>
    %37 = arith.mulf %28, %11 : vector<16x32xf32>
    %38 = arith.mulf %22, %30 : vector<16x32xf32>
    %39 = arith.addf %37, %38 : vector<16x32xf32>
    %40 = math.tanh %39 : vector<16x32xf32>
    %41 = arith.mulf %36, %40 : vector<16x32xf32>
    %42 = arith.index_cast %c0_i32 : i32 to index
    %c0_19 = arith.constant 0 : index
    %c0_20 = arith.constant 0 : index
    %43 = vector.load %arg9[%42, %c0_19, %c0_20] : memref<8x16x32xf32, #tpu.memory_space<vmem>>, vector<1x16x32xf32>
    %44 = vector.shape_cast %43 : vector<1x16x32xf32> to vector<16x32xf32>
    %45 = vector.shape_cast %41 : vector<16x32xf32> to vector<1x16x32xf32>
    tpu.vector_store %arg9[%42, %c0_19, %c0_20], %45 {strides = array<i32>} : memref<8x16x32xf32, #tpu.memory_space<vmem>>, vector<1x16x32xf32>,
    %c1_i32 = arith.constant 1 : i32
    %46 = arith.index_cast %c1_i32 : i32 to index
    %c0_21 = arith.constant 0 : index
    %c0_22 = arith.constant 0 : index
    %47 = vector.load %arg8[%46, %c0_21, %c0_22] : memref<8x16x128xf32, #tpu.memory_space<vmem>>, vector<1x16x128xf32>
    %48 = vector.shape_cast %47 : vector<1x16x128xf32> to vector<16x128xf32>
    %cst_23 = arith.constant dense<0.000000e+00> : vector<16x128xf32>
    %49 = tpu.matmul %41, %1, %cst_23 {dimension_numbers = #tpu.dot_dimension_numbers<[1], [0], [0], [1], [0, 0, 1, 1], [], []>} : vector<16x32xf32>, vector<32x128xf32>, vector<16x128xf32> -> vector<16x128xf32>
    %50 = arith.addf %48, %49 : vector<16x128xf32>
    %51 = vector.extract_strided_slice %50 {offsets = [0, 0], sizes = [16, 32], strides = [1, 1]} : vector<16x128xf32> to vector<16x32xf32>
    %52 = arith.negf %51 : vector<16x32xf32>
    %53 = math.exp %52 : vector<16x32xf32>
    %cst_24 = arith.constant 1.000000e+00 : f32
    %54 = vector.broadcast %cst_24 : f32 to vector<16x32xf32>
    %55 = arith.addf %54, %53 : vector<16x32xf32>
    %56 = arith.divf %54, %55 : vector<16x32xf32>
    %57 = vector.extract_strided_slice %50 {offsets = [0, 32], sizes = [16, 32], strides = [1, 1]} : vector<16x128xf32> to vector<16x32xf32>
    %58 = arith.negf %57 : vector<16x32xf32>
    %59 = math.exp %58 : vector<16x32xf32>
    %cst_25 = arith.constant 1.000000e+00 : f32
    %60 = vector.broadcast %cst_25 : f32 to vector<16x32xf32>
    %61 = arith.addf %60, %59 : vector<16x32xf32>
    %62 = arith.divf %60, %61 : vector<16x32xf32>
    %63 = vector.extract_strided_slice %50 {offsets = [0, 64], sizes = [16, 32], strides = [1, 1]} : vector<16x128xf32> to vector<16x32xf32>
    %64 = math.tanh %63 : vector<16x32xf32>
    %65 = vector.extract_strided_slice %50 {offsets = [0, 96], sizes = [16, 32], strides = [1, 1]} : vector<16x128xf32> to vector<16x32xf32>
    %66 = arith.negf %65 : vector<16x32xf32>
    %67 = math.exp %66 : vector<16x32xf32>
    %cst_26 = arith.constant 1.000000e+00 : f32
    %68 = vector.broadcast %cst_26 : f32 to vector<16x32xf32>
    %69 = arith.addf %68, %67 : vector<16x32xf32>
    %70 = arith.divf %68, %69 : vector<16x32xf32>
    %71 = arith.mulf %62, %39 : vector<16x32xf32>
    %72 = arith.mulf %56, %64 : vector<16x32xf32>
    %73 = arith.addf %71, %72 : vector<16x32xf32>
    %74 = math.tanh %73 : vector<16x32xf32>
    %75 = arith.mulf %70, %74 : vector<16x32xf32>
    %76 = arith.index_cast %c1_i32 : i32 to index
    %c0_27 = arith.constant 0 : index
    %c0_28 = arith.constant 0 : index
    %77 = vector.load %arg9[%76, %c0_27, %c0_28] : memref<8x16x32xf32, #tpu.memory_space<vmem>>, vector<1x16x32xf32>
    %78 = vector.shape_cast %77 : vector<1x16x32xf32> to vector<16x32xf32>
    %79 = vector.shape_cast %75 : vector<16x32xf32> to vector<1x16x32xf32>
    tpu.vector_store %arg9[%76, %c0_27, %c0_28], %79 {strides = array<i32>} : memref<8x16x32xf32, #tpu.memory_space<vmem>>, vector<1x16x32xf32>,
    %c2_i32 = arith.constant 2 : i32
    %80 = arith.index_cast %c2_i32 : i32 to index
    %c0_29 = arith.constant 0 : index
    %c0_30 = arith.constant 0 : index
    %81 = vector.load %arg8[%80, %c0_29, %c0_30] : memref<8x16x128xf32, #tpu.memory_space<vmem>>, vector<1x16x128xf32>
    %82 = vector.shape_cast %81 : vector<1x16x128xf32> to vector<16x128xf32>
    %cst_31 = arith.constant dense<0.000000e+00> : vector<16x128xf32>
    %83 = tpu.matmul %75, %1, %cst_31 {dimension_numbers = #tpu.dot_dimension_numbers<[1], [0], [0], [1], [0, 0, 1, 1], [], []>} : vector<16x32xf32>, vector<32x128xf32>, vector<16x128xf32> -> vector<16x128xf32>
    %84 = arith.addf %82, %83 : vector<16x128xf32>
    %85 = vector.extract_strided_slice %84 {offsets = [0, 0], sizes = [16, 32], strides = [1, 1]} : vector<16x128xf32> to vector<16x32xf32>
    %86 = arith.negf %85 : vector<16x32xf32>
    %87 = math.exp %86 : vector<16x32xf32>
    %cst_32 = arith.constant 1.000000e+00 : f32
    %88 = vector.broadcast %cst_32 : f32 to vector<16x32xf32>
    %89 = arith.addf %88, %87 : vector<16x32xf32>
    %90 = arith.divf %88, %89 : vector<16x32xf32>
    %91 = vector.extract_strided_slice %84 {offsets = [0, 32], sizes = [16, 32], strides = [1, 1]} : vector<16x128xf32> to vector<16x32xf32>
    %92 = arith.negf %91 : vector<16x32xf32>
    %93 = math.exp %92 : vector<16x32xf32>
    %cst_33 = arith.constant 1.000000e+00 : f32
    %94 = vector.broadcast %cst_33 : f32 to vector<16x32xf32>
    %95 = arith.addf %94, %93 : vector<16x32xf32>
    %96 = arith.divf %94, %95 : vector<16x32xf32>
    %97 = vector.extract_strided_slice %84 {offsets = [0, 64], sizes = [16, 32], strides = [1, 1]} : vector<16x128xf32> to vector<16x32xf32>
    %98 = math.tanh %97 : vector<16x32xf32>
    %99 = vector.extract_strided_slice %84 {offsets = [0, 96], sizes = [16, 32], strides = [1, 1]} : vector<16x128xf32> to vector<16x32xf32>
    %100 = arith.negf %99 : vector<16x32xf32>
    %101 = math.exp %100 : vector<16x32xf32>
    %cst_34 = arith.constant 1.000000e+00 : f32
    %102 = vector.broadcast %cst_34 : f32 to vector<16x32xf32>
    %103 = arith.addf %102, %101 : vector<16x32xf32>
    %104 = arith.divf %102, %103 : vector<16x32xf32>
    %105 = arith.mulf %96, %73 : vector<16x32xf32>
    %106 = arith.mulf %90, %98 : vector<16x32xf32>
    %107 = arith.addf %105, %106 : vector<16x32xf32>
    %108 = math.tanh %107 : vector<16x32xf32>
    %109 = arith.mulf %104, %108 : vector<16x32xf32>
    %110 = arith.index_cast %c2_i32 : i32 to index
    %c0_35 = arith.constant 0 : index
    %c0_36 = arith.constant 0 : index
    %111 = vector.load %arg9[%110, %c0_35, %c0_36] : memref<8x16x32xf32, #tpu.memory_space<vmem>>, vector<1x16x32xf32>
    %112 = vector.shape_cast %111 : vector<1x16x32xf32> to vector<16x32xf32>
    %113 = vector.shape_cast %109 : vector<16x32xf32> to vector<1x16x32xf32>
    tpu.vector_store %arg9[%110, %c0_35, %c0_36], %113 {strides = array<i32>} : memref<8x16x32xf32, #tpu.memory_space<vmem>>, vector<1x16x32xf32>,
    %c3_i32 = arith.constant 3 : i32
    %114 = arith.index_cast %c3_i32 : i32 to index
    %c0_37 = arith.constant 0 : index
    %c0_38 = arith.constant 0 : index
    %115 = vector.load %arg8[%114, %c0_37, %c0_38] : memref<8x16x128xf32, #tpu.memory_space<vmem>>, vector<1x16x128xf32>
    %116 = vector.shape_cast %115 : vector<1x16x128xf32> to vector<16x128xf32>
    %cst_39 = arith.constant dense<0.000000e+00> : vector<16x128xf32>
    %117 = tpu.matmul %109, %1, %cst_39 {dimension_numbers = #tpu.dot_dimension_numbers<[1], [0], [0], [1], [0, 0, 1, 1], [], []>} : vector<16x32xf32>, vector<32x128xf32>, vector<16x128xf32> -> vector<16x128xf32>
    %118 = arith.addf %116, %117 : vector<16x128xf32>
    %119 = vector.extract_strided_slice %118 {offsets = [0, 0], sizes = [16, 32], strides = [1, 1]} : vector<16x128xf32> to vector<16x32xf32>
    %120 = arith.negf %119 : vector<16x32xf32>
    %121 = math.exp %120 : vector<16x32xf32>
    %cst_40 = arith.constant 1.000000e+00 : f32
    %122 = vector.broadcast %cst_40 : f32 to vector<16x32xf32>
    %123 = arith.addf %122, %121 : vector<16x32xf32>
    %124 = arith.divf %122, %123 : vector<16x32xf32>
    %125 = vector.extract_strided_slice %118 {offsets = [0, 32], sizes = [16, 32], strides = [1, 1]} : vector<16x128xf32> to vector<16x32xf32>
    %126 = arith.negf %125 : vector<16x32xf32>
    %127 = math.exp %126 : vector<16x32xf32>
    %cst_41 = arith.constant 1.000000e+00 : f32
    %128 = vector.broadcast %cst_41 : f32 to vector<16x32xf32>
    %129 = arith.addf %128, %127 : vector<16x32xf32>
    %130 = arith.divf %128, %129 : vector<16x32xf32>
    %131 = vector.extract_strided_slice %118 {offsets = [0, 64], sizes = [16, 32], strides = [1, 1]} : vector<16x128xf32> to vector<16x32xf32>
    %132 = math.tanh %131 : vector<16x32xf32>
    %133 = vector.extract_strided_slice %118 {offsets = [0, 96], sizes = [16, 32], strides = [1, 1]} : vector<16x128xf32> to vector<16x32xf32>
    %134 = arith.negf %133 : vector<16x32xf32>
    %135 = math.exp %134 : vector<16x32xf32>
    %cst_42 = arith.constant 1.000000e+00 : f32
    %136 = vector.broadcast %cst_42 : f32 to vector<16x32xf32>
    %137 = arith.addf %136, %135 : vector<16x32xf32>
    %138 = arith.divf %136, %137 : vector<16x32xf32>
    %139 = arith.mulf %130, %107 : vector<16x32xf32>
    %140 = arith.mulf %124, %132 : vector<16x32xf32>
    %141 = arith.addf %139, %140 : vector<16x32xf32>
    %142 = math.tanh %141 : vector<16x32xf32>
    %143 = arith.mulf %138, %142 : vector<16x32xf32>
    %144 = arith.index_cast %c3_i32 : i32 to index
    %c0_43 = arith.constant 0 : index
    %c0_44 = arith.constant 0 : index
    %145 = vector.load %arg9[%144, %c0_43, %c0_44] : memref<8x16x32xf32, #tpu.memory_space<vmem>>, vector<1x16x32xf32>
    %146 = vector.shape_cast %145 : vector<1x16x32xf32> to vector<16x32xf32>
    %147 = vector.shape_cast %143 : vector<16x32xf32> to vector<1x16x32xf32>
    tpu.vector_store %arg9[%144, %c0_43, %c0_44], %147 {strides = array<i32>} : memref<8x16x32xf32, #tpu.memory_space<vmem>>, vector<1x16x32xf32>,
    %c4_i32 = arith.constant 4 : i32
    %148 = arith.index_cast %c4_i32 : i32 to index
    %c0_45 = arith.constant 0 : index
    %c0_46 = arith.constant 0 : index
    %149 = vector.load %arg8[%148, %c0_45, %c0_46] : memref<8x16x128xf32, #tpu.memory_space<vmem>>, vector<1x16x128xf32>
    %150 = vector.shape_cast %149 : vector<1x16x128xf32> to vector<16x128xf32>
    %cst_47 = arith.constant dense<0.000000e+00> : vector<16x128xf32>
    %151 = tpu.matmul %143, %1, %cst_47 {dimension_numbers = #tpu.dot_dimension_numbers<[1], [0], [0], [1], [0, 0, 1, 1], [], []>} : vector<16x32xf32>, vector<32x128xf32>, vector<16x128xf32> -> vector<16x128xf32>
    %152 = arith.addf %150, %151 : vector<16x128xf32>
    %153 = vector.extract_strided_slice %152 {offsets = [0, 0], sizes = [16, 32], strides = [1, 1]} : vector<16x128xf32> to vector<16x32xf32>
    %154 = arith.negf %153 : vector<16x32xf32>
    %155 = math.exp %154 : vector<16x32xf32>
    %cst_48 = arith.constant 1.000000e+00 : f32
    %156 = vector.broadcast %cst_48 : f32 to vector<16x32xf32>
    %157 = arith.addf %156, %155 : vector<16x32xf32>
    %158 = arith.divf %156, %157 : vector<16x32xf32>
    %159 = vector.extract_strided_slice %152 {offsets = [0, 32], sizes = [16, 32], strides = [1, 1]} : vector<16x128xf32> to vector<16x32xf32>
    %160 = arith.negf %159 : vector<16x32xf32>
    %161 = math.exp %160 : vector<16x32xf32>
    %cst_49 = arith.constant 1.000000e+00 : f32
    %162 = vector.broadcast %cst_49 : f32 to vector<16x32xf32>
    %163 = arith.addf %162, %161 : vector<16x32xf32>
    %164 = arith.divf %162, %163 : vector<16x32xf32>
    %165 = vector.extract_strided_slice %152 {offsets = [0, 64], sizes = [16, 32], strides = [1, 1]} : vector<16x128xf32> to vector<16x32xf32>
    %166 = math.tanh %165 : vector<16x32xf32>
    %167 = vector.extract_strided_slice %152 {offsets = [0, 96], sizes = [16, 32], strides = [1, 1]} : vector<16x128xf32> to vector<16x32xf32>
    %168 = arith.negf %167 : vector<16x32xf32>
    %169 = math.exp %168 : vector<16x32xf32>
    %cst_50 = arith.constant 1.000000e+00 : f32
    %170 = vector.broadcast %cst_50 : f32 to vector<16x32xf32>
    %171 = arith.addf %170, %169 : vector<16x32xf32>
    %172 = arith.divf %170, %171 : vector<16x32xf32>
    %173 = arith.mulf %164, %141 : vector<16x32xf32>
    %174 = arith.mulf %158, %166 : vector<16x32xf32>
    %175 = arith.addf %173, %174 : vector<16x32xf32>
    %176 = math.tanh %175 : vector<16x32xf32>
    %177 = arith.mulf %172, %176 : vector<16x32xf32>
    %178 = arith.index_cast %c4_i32 : i32 to index
    %c0_51 = arith.constant 0 : index
    %c0_52 = arith.constant 0 : index
    %179 = vector.load %arg9[%178, %c0_51, %c0_52] : memref<8x16x32xf32, #tpu.memory_space<vmem>>, vector<1x16x32xf32>
    %180 = vector.shape_cast %179 : vector<1x16x32xf32> to vector<16x32xf32>
    %181 = vector.shape_cast %177 : vector<16x32xf32> to vector<1x16x32xf32>
    tpu.vector_store %arg9[%178, %c0_51, %c0_52], %181 {strides = array<i32>} : memref<8x16x32xf32, #tpu.memory_space<vmem>>, vector<1x16x32xf32>,
    %c5_i32 = arith.constant 5 : i32
    %182 = arith.index_cast %c5_i32 : i32 to index
    %c0_53 = arith.constant 0 : index
    %c0_54 = arith.constant 0 : index
    %183 = vector.load %arg8[%182, %c0_53, %c0_54] : memref<8x16x128xf32, #tpu.memory_space<vmem>>, vector<1x16x128xf32>
    %184 = vector.shape_cast %183 : vector<1x16x128xf32> to vector<16x128xf32>
    %cst_55 = arith.constant dense<0.000000e+00> : vector<16x128xf32>
    %185 = tpu.matmul %177, %1, %cst_55 {dimension_numbers = #tpu.dot_dimension_numbers<[1], [0], [0], [1], [0, 0, 1, 1], [], []>} : vector<16x32xf32>, vector<32x128xf32>, vector<16x128xf32> -> vector<16x128xf32>
    %186 = arith.addf %184, %185 : vector<16x128xf32>
    %187 = vector.extract_strided_slice %186 {offsets = [0, 0], sizes = [16, 32], strides = [1, 1]} : vector<16x128xf32> to vector<16x32xf32>
    %188 = arith.negf %187 : vector<16x32xf32>
    %189 = math.exp %188 : vector<16x32xf32>
    %cst_56 = arith.constant 1.000000e+00 : f32
    %190 = vector.broadcast %cst_56 : f32 to vector<16x32xf32>
    %191 = arith.addf %190, %189 : vector<16x32xf32>
    %192 = arith.divf %190, %191 : vector<16x32xf32>
    %193 = vector.extract_strided_slice %186 {offsets = [0, 32], sizes = [16, 32], strides = [1, 1]} : vector<16x128xf32> to vector<16x32xf32>
    %194 = arith.negf %193 : vector<16x32xf32>
    %195 = math.exp %194 : vector<16x32xf32>
    %cst_57 = arith.constant 1.000000e+00 : f32
    %196 = vector.broadcast %cst_57 : f32 to vector<16x32xf32>
    %197 = arith.addf %196, %195 : vector<16x32xf32>
    %198 = arith.divf %196, %197 : vector<16x32xf32>
    %199 = vector.extract_strided_slice %186 {offsets = [0, 64], sizes = [16, 32], strides = [1, 1]} : vector<16x128xf32> to vector<16x32xf32>
    %200 = math.tanh %199 : vector<16x32xf32>
    %201 = vector.extract_strided_slice %186 {offsets = [0, 96], sizes = [16, 32], strides = [1, 1]} : vector<16x128xf32> to vector<16x32xf32>
    %202 = arith.negf %201 : vector<16x32xf32>
    %203 = math.exp %202 : vector<16x32xf32>
    %cst_58 = arith.constant 1.000000e+00 : f32
    %204 = vector.broadcast %cst_58 : f32 to vector<16x32xf32>
    %205 = arith.addf %204, %203 : vector<16x32xf32>
    %206 = arith.divf %204, %205 : vector<16x32xf32>
    %207 = arith.mulf %198, %175 : vector<16x32xf32>
    %208 = arith.mulf %192, %200 : vector<16x32xf32>
    %209 = arith.addf %207, %208 : vector<16x32xf32>
    %210 = math.tanh %209 : vector<16x32xf32>
    %211 = arith.mulf %206, %210 : vector<16x32xf32>
    %212 = arith.index_cast %c5_i32 : i32 to index
    %c0_59 = arith.constant 0 : index
    %c0_60 = arith.constant 0 : index
    %213 = vector.load %arg9[%212, %c0_59, %c0_60] : memref<8x16x32xf32, #tpu.memory_space<vmem>>, vector<1x16x32xf32>
    %214 = vector.shape_cast %213 : vector<1x16x32xf32> to vector<16x32xf32>
    %215 = vector.shape_cast %211 : vector<16x32xf32> to vector<1x16x32xf32>
    tpu.vector_store %arg9[%212, %c0_59, %c0_60], %215 {strides = array<i32>} : memref<8x16x32xf32, #tpu.memory_space<vmem>>, vector<1x16x32xf32>,
    %c6_i32 = arith.constant 6 : i32
    %216 = arith.index_cast %c6_i32 : i32 to index
    %c0_61 = arith.constant 0 : index
    %c0_62 = arith.constant 0 : index
    %217 = vector.load %arg8[%216, %c0_61, %c0_62] : memref<8x16x128xf32, #tpu.memory_space<vmem>>, vector<1x16x128xf32>
    %218 = vector.shape_cast %217 : vector<1x16x128xf32> to vector<16x128xf32>
    %cst_63 = arith.constant dense<0.000000e+00> : vector<16x128xf32>
    %219 = tpu.matmul %211, %1, %cst_63 {dimension_numbers = #tpu.dot_dimension_numbers<[1], [0], [0], [1], [0, 0, 1, 1], [], []>} : vector<16x32xf32>, vector<32x128xf32>, vector<16x128xf32> -> vector<16x128xf32>
    %220 = arith.addf %218, %219 : vector<16x128xf32>
    %221 = vector.extract_strided_slice %220 {offsets = [0, 0], sizes = [16, 32], strides = [1, 1]} : vector<16x128xf32> to vector<16x32xf32>
    %222 = arith.negf %221 : vector<16x32xf32>
    %223 = math.exp %222 : vector<16x32xf32>
    %cst_64 = arith.constant 1.000000e+00 : f32
    %224 = vector.broadcast %cst_64 : f32 to vector<16x32xf32>
    %225 = arith.addf %224, %223 : vector<16x32xf32>
    %226 = arith.divf %224, %225 : vector<16x32xf32>
    %227 = vector.extract_strided_slice %220 {offsets = [0, 32], sizes = [16, 32], strides = [1, 1]} : vector<16x128xf32> to vector<16x32xf32>
    %228 = arith.negf %227 : vector<16x32xf32>
    %229 = math.exp %228 : vector<16x32xf32>
    %cst_65 = arith.constant 1.000000e+00 : f32
    %230 = vector.broadcast %cst_65 : f32 to vector<16x32xf32>
    %231 = arith.addf %230, %229 : vector<16x32xf32>
    %232 = arith.divf %230, %231 : vector<16x32xf32>
    %233 = vector.extract_strided_slice %220 {offsets = [0, 64], sizes = [16, 32], strides = [1, 1]} : vector<16x128xf32> to vector<16x32xf32>
    %234 = math.tanh %233 : vector<16x32xf32>
    %235 = vector.extract_strided_slice %220 {offsets = [0, 96], sizes = [16, 32], strides = [1, 1]} : vector<16x128xf32> to vector<16x32xf32>
    %236 = arith.negf %235 : vector<16x32xf32>
    %237 = math.exp %236 : vector<16x32xf32>
    %cst_66 = arith.constant 1.000000e+00 : f32
    %238 = vector.broadcast %cst_66 : f32 to vector<16x32xf32>
    %239 = arith.addf %238, %237 : vector<16x32xf32>
    %240 = arith.divf %238, %239 : vector<16x32xf32>
    %241 = arith.mulf %232, %209 : vector<16x32xf32>
    %242 = arith.mulf %226, %234 : vector<16x32xf32>
    %243 = arith.addf %241, %242 : vector<16x32xf32>
    %244 = math.tanh %243 : vector<16x32xf32>
    %245 = arith.mulf %240, %244 : vector<16x32xf32>
    %246 = arith.index_cast %c6_i32 : i32 to index
    %c0_67 = arith.constant 0 : index
    %c0_68 = arith.constant 0 : index
    %247 = vector.load %arg9[%246, %c0_67, %c0_68] : memref<8x16x32xf32, #tpu.memory_space<vmem>>, vector<1x16x32xf32>
    %248 = vector.shape_cast %247 : vector<1x16x32xf32> to vector<16x32xf32>
    %249 = vector.shape_cast %245 : vector<16x32xf32> to vector<1x16x32xf32>
    tpu.vector_store %arg9[%246, %c0_67, %c0_68], %249 {strides = array<i32>} : memref<8x16x32xf32, #tpu.memory_space<vmem>>, vector<1x16x32xf32>,
    %c7_i32 = arith.constant 7 : i32
    %250 = arith.index_cast %c7_i32 : i32 to index
    %c0_69 = arith.constant 0 : index
    %c0_70 = arith.constant 0 : index
    %251 = vector.load %arg8[%250, %c0_69, %c0_70] : memref<8x16x128xf32, #tpu.memory_space<vmem>>, vector<1x16x128xf32>
    %252 = vector.shape_cast %251 : vector<1x16x128xf32> to vector<16x128xf32>
    %cst_71 = arith.constant dense<0.000000e+00> : vector<16x128xf32>
    %253 = tpu.matmul %245, %1, %cst_71 {dimension_numbers = #tpu.dot_dimension_numbers<[1], [0], [0], [1], [0, 0, 1, 1], [], []>} : vector<16x32xf32>, vector<32x128xf32>, vector<16x128xf32> -> vector<16x128xf32>
    %254 = arith.addf %252, %253 : vector<16x128xf32>
    %255 = vector.extract_strided_slice %254 {offsets = [0, 0], sizes = [16, 32], strides = [1, 1]} : vector<16x128xf32> to vector<16x32xf32>
    %256 = arith.negf %255 : vector<16x32xf32>
    %257 = math.exp %256 : vector<16x32xf32>
    %cst_72 = arith.constant 1.000000e+00 : f32
    %258 = vector.broadcast %cst_72 : f32 to vector<16x32xf32>
    %259 = arith.addf %258, %257 : vector<16x32xf32>
    %260 = arith.divf %258, %259 : vector<16x32xf32>
    %261 = vector.extract_strided_slice %254 {offsets = [0, 32], sizes = [16, 32], strides = [1, 1]} : vector<16x128xf32> to vector<16x32xf32>
    %262 = arith.negf %261 : vector<16x32xf32>
    %263 = math.exp %262 : vector<16x32xf32>
    %cst_73 = arith.constant 1.000000e+00 : f32
    %264 = vector.broadcast %cst_73 : f32 to vector<16x32xf32>
    %265 = arith.addf %264, %263 : vector<16x32xf32>
    %266 = arith.divf %264, %265 : vector<16x32xf32>
    %267 = vector.extract_strided_slice %254 {offsets = [0, 64], sizes = [16, 32], strides = [1, 1]} : vector<16x128xf32> to vector<16x32xf32>
    %268 = math.tanh %267 : vector<16x32xf32>
    %269 = vector.extract_strided_slice %254 {offsets = [0, 96], sizes = [16, 32], strides = [1, 1]} : vector<16x128xf32> to vector<16x32xf32>
    %270 = arith.negf %269 : vector<16x32xf32>
    %271 = math.exp %270 : vector<16x32xf32>
    %cst_74 = arith.constant 1.000000e+00 : f32
    %272 = vector.broadcast %cst_74 : f32 to vector<16x32xf32>
    %273 = arith.addf %272, %271 : vector<16x32xf32>
    %274 = arith.divf %272, %273 : vector<16x32xf32>
    %275 = arith.mulf %266, %243 : vector<16x32xf32>
    %276 = arith.mulf %260, %268 : vector<16x32xf32>
    %277 = arith.addf %275, %276 : vector<16x32xf32>
    %278 = math.tanh %277 : vector<16x32xf32>
    %279 = arith.mulf %274, %278 : vector<16x32xf32>
    %280 = arith.index_cast %c7_i32 : i32 to index
    %c0_75 = arith.constant 0 : index
    %c0_76 = arith.constant 0 : index
    %281 = vector.load %arg9[%280, %c0_75, %c0_76] : memref<8x16x32xf32, #tpu.memory_space<vmem>>, vector<1x16x32xf32>
    %282 = vector.shape_cast %281 : vector<1x16x32xf32> to vector<16x32xf32>
    %283 = vector.shape_cast %279 : vector<16x32xf32> to vector<1x16x32xf32>
    tpu.vector_store %arg9[%280, %c0_75, %c0_76], %283 {strides = array<i32>} : memref<8x16x32xf32, #tpu.memory_space<vmem>>, vector<1x16x32xf32>,
    %c8_i32 = arith.constant 8 : i32
    %c0_77 = arith.constant 0 : index
    %c0_78 = arith.constant 0 : index
    %c0_79 = arith.constant 0 : index
    %284 = vector.load %arg9[%c0_77, %c0_78, %c0_79] : memref<8x16x32xf32, #tpu.memory_space<vmem>>, vector<8x16x32xf32>
    %285 = vector.shape_cast %284 : vector<8x16x32xf32> to vector<128x32xf32>
    %c0_80 = arith.constant 0 : index
    %c0_81 = arith.constant 0 : index
    %286 = vector.load %arg5[%c0_80, %c0_81] : memref<32x16xf32, #tpu.memory_space<vmem>>, vector<32x16xf32>
    %cst_82 = arith.constant dense<0.000000e+00> : vector<128x16xf32>
    %287 = tpu.matmul %285, %286, %cst_82 {dimension_numbers = #tpu.dot_dimension_numbers<[1], [0], [0], [1], [0, 0, 1, 1], [], []>} : vector<128x32xf32>, vector<32x16xf32>, vector<128x16xf32> -> vector<128x16xf32>
    %c0_83 = arith.constant 0 : index
    %c0_84 = arith.constant 0 : index
    %288 = vector.load %arg6[%c0_83, %c0_84] : memref<1x16xf32, #tpu.memory_space<vmem>>, vector<1x16xf32>
    %289 = vector.broadcast %288 : vector<1x16xf32> to vector<128x16xf32>
    %290 = arith.addf %287, %289 : vector<128x16xf32>
    %291 = vector.shape_cast %290 : vector<128x16xf32> to vector<8x16x16xf32>
    %c0_85 = arith.constant 0 : index
    %c0_86 = arith.constant 0 : index
    %c0_87 = arith.constant 0 : index
    %292 = vector.load %arg7[%c0_85, %c0_86, %c0_87] : memref<8x16x16xf32, #tpu.memory_space<vmem>>, vector<8x16x16xf32>
    tpu.vector_store %arg7[%c0_85, %c0_86, %c0_87], %291 {strides = array<i32>} : memref<8x16x16xf32, #tpu.memory_space<vmem>>, vector<8x16x16xf32>,
    return
  }
  func.func @transform_0(%arg0: i32) -> (i32, i32, i32) {
    %c0_i32 = arith.constant 0 : i32
    %c0_i32_0 = arith.constant 0 : i32
    %c0_i32_1 = arith.constant 0 : i32
    return %c0_i32, %arg0, %c0_i32_0 : i32, i32, i32
  }
  func.func @transform_1(%arg0: i32) -> (i32, i32) {
    %c0_i32 = arith.constant 0 : i32
    %c0_i32_0 = arith.constant 0 : i32
    %c0_i32_1 = arith.constant 0 : i32
    return %c0_i32, %c0_i32_0 : i32, i32
  }
  func.func @transform_2(%arg0: i32) -> (i32, i32) {
    %c0_i32 = arith.constant 0 : i32
    %c0_i32_0 = arith.constant 0 : i32
    %c0_i32_1 = arith.constant 0 : i32
    return %c0_i32, %c0_i32_0 : i32, i32
  }
  func.func @transform_3(%arg0: i32) -> (i32, i32) {
    %c0_i32 = arith.constant 0 : i32
    %c0_i32_0 = arith.constant 0 : i32
    %c0_i32_1 = arith.constant 0 : i32
    return %c0_i32, %c0_i32_0 : i32, i32
  }
  func.func @transform_4(%arg0: i32) -> (i32, i32) {
    %c0_i32 = arith.constant 0 : i32
    %c0_i32_0 = arith.constant 0 : i32
    %c0_i32_1 = arith.constant 0 : i32
    return %c0_i32, %c0_i32_0 : i32, i32
  }
  func.func @transform_5(%arg0: i32) -> (i32, i32) {
    %c0_i32 = arith.constant 0 : i32
    %c0_i32_0 = arith.constant 0 : i32
    %c0_i32_1 = arith.constant 0 : i32
    return %c0_i32, %c0_i32_0 : i32, i32
  }
  func.func @transform_6(%arg0: i32) -> (i32, i32, i32) {
    %c0_i32 = arith.constant 0 : i32
    %c0_i32_0 = arith.constant 0 : i32
    %c0_i32_1 = arith.constant 0 : i32
    return %c0_i32, %arg0, %c0_i32_0 : i32, i32, i32
  }
}

</mosaic_0001>

<bundles_post_ra>
// kernel: dual_rnn_block.5
= control target key start
LH: loop header
LB: loop body
LE: loop exit
PB: predicated region body
PF: predicated region fallthrough
CT: control target
= control target key end

     0   :  { %s749_s15 = smov 0   ;;  %s751_s16 = smov 0   ;;  %s861_s0 = inlined_call_operand.vmem [shape: f32[8,2,8,16], index: 0, kind: input, shape index: {}]   ;;  %s862_s1 = inlined_call_operand.vmem [shape: f32[8,2,8,16], index: 1, kind: input, shape index: {}]   ;;  %s863_s2 = inlined_call_operand.vmem [shape: f32[1,16], index: 2, kind: input, shape index: {}]   ;;  %s864_s3 = inlined_call_operand.vmem [shape: f32[1,16], index: 3, kind: input, shape index: {}]   ;;  %s865_s4 = inlined_call_operand.vmem [shape: f32[8,2,8,16], index: 4, kind: output, shape index: {}]  }
   0x1   :  { %s753_s17 = smov 0  }
   0x2 LB: > { %s644_s18 = sadd.s32 4294967295, %s721_s17   ;;  %s766_s19 = sadd.s32 1, %s721_s17   ;;  %s721_s17 = sphi %s753_s17, %s870_s17   ;;  %s717_s16 = sphi %s751_s16, %s869_s16   ;;  %s713_s15 = sphi %s749_s15, %s868_s15  }
   0x3   : > { %s18_s20 = ssub.s32 %s721_s17, %s766_s19  ;;  %s21_s21 = sadd.s32 1, %s717_s16 }
   0x4   : > { %p19_p0 = scmp.eq.s32.totalorder %s18_s20, 0  ;;  %p28_p1 = scmp.ne.s32.totalorder %s717_s16, %s713_s15 }
   0x5   : > { %p29_p2 = scmp.eq.s32.totalorder %s721_s17, 0  ;;  %p126_p3 = scmp.eq.s32.totalorder %s644_s18, 1 }
   0x6   : > { %s777_s22 = scalar_select %p19_p0, %s717_s16, %s21_s21  }
   0x7   : > { %p779_p4 = por %p29_p2, %p28_p1  ;;  %p783_p5 = por %p126_p3, %p28_p1 }
   0x8   : > { %p647_p6 = scmp.ge.s32.totalorder %s721_s17, 2 }
   0xa   : > { %154 = sbr.rel (%p647_p6) target bundleno = 39 (0x27), region = 24 }
   0xf   : > { %157 = sbr.rel (!%p779_p4) target bundleno = 27 (0x1b), region = 28  ;;  %s159_s25 = sand.u32 (%p779_p4), 1, %s717_s16  }
  0x10   : > { %s649_s26 = sshll.u32 (%p779_p4), %s721_s17, 3  ;;  %s648_s27 = sshll.u32 (%p779_p4), %s159_s25, 6 }
  0x11   : > { %s163_s30 = scalar_lea.vmem (%p779_p4), %s861_s0, %s649_s26  ;;  %s161_s5 = scalar_lea.vmem (%p779_p4), [#allocation2], %s648_s27 }
  0x12   : > { %v206_v0 = vld [vmem:[%s163_s30] sm:$0xff] (%p779_p4)  ;;  %v208_v1 = vld [vmem:[%s163_s30 + $0x10] sm:$0xff] (%p779_p4) }
  0x13   : > { %v210_v2 = vld [vmem:[%s163_s30 + $0x20] sm:$0xff] (%p779_p4)  ;;  %207 = vst [vmem:[%s161_s5] sm:$0xff] (%p779_p4), %v206_v0  ;;  %v212_v3 = vld [vmem:[%s163_s30 + $0x30] sm:$0xff] (%p779_p4) }
  0x14   : > { %209 = vst [vmem:[%s161_s5 + $0x8] sm:$0xff] %v208_v1  ;;  %v214_v4 = vld [vmem:[%s163_s30 + $0x40] sm:$0xff]  ;;  %v216_v5 = vld [vmem:[%s163_s30 + $0x50] sm:$0xff] }
  0x15   : > { %211 = vst [vmem:[%s161_s5 + $0x10] sm:$0xff] %v210_v2  ;;  %v218_v6 = vld [vmem:[%s163_s30 + $0x60] sm:$0xff]  ;;  %v220_v7 = vld [vmem:[%s163_s30 + $0x70] sm:$0xff] }
  0x16   : > { %213 = vst [vmem:[%s161_s5 + $0x18] sm:$0xff] %v212_v3 }
  0x17   : > { %215 = vst [vmem:[%s161_s5 + $0x20] sm:$0xff] %v214_v4 }
  0x18   : > { %217 = vst [vmem:[%s161_s5 + $0x28] sm:$0xff] %v216_v5 }
  0x19   : > { %219 = vst [vmem:[%s161_s5 + $0x30] sm:$0xff] %v218_v6 }
  0x1a   : > { %221 = vst [vmem:[%s161_s5 + $0x38] sm:$0xff] %v220_v7 }
  0x1b PF: > { %227 = sbr.rel (!%p779_p4) target bundleno = 39 (0x27), region = 66  ;;  %s229_s6 = sand.u32 (%p779_p4), 1, %s717_s16  }
  0x1c   : > { %s651_s7 = sshll.u32 (%p779_p4), %s721_s17, 3  ;;  %s650_s8 = sshll.u32 (%p779_p4), %s229_s6, 6 }
  0x1d   : > { %s233_s11 = scalar_lea.vmem (%p779_p4), %s862_s1, %s651_s7  ;;  %s231_s12 = scalar_lea.vmem (%p779_p4), [#allocation3], %s650_s8 }
  0x1e   : > { %v276_v8 = vld [vmem:[%s233_s11] sm:$0xff] (%p779_p4)  ;;  %v278_v9 = vld [vmem:[%s233_s11 + $0x10] sm:$0xff] (%p779_p4) }
  0x1f   : > { %v280_v10 = vld [vmem:[%s233_s11 + $0x20] sm:$0xff] (%p779_p4)  ;;  %277 = vst [vmem:[%s231_s12] sm:$0xff] (%p779_p4), %v276_v8  ;;  %v282_v11 = vld [vmem:[%s233_s11 + $0x30] sm:$0xff] (%p779_p4) }
  0x20   : > { %279 = vst [vmem:[%s231_s12 + $0x8] sm:$0xff] %v278_v9  ;;  %v284_v12 = vld [vmem:[%s233_s11 + $0x40] sm:$0xff]  ;;  %v286_v13 = vld [vmem:[%s233_s11 + $0x50] sm:$0xff] }
  0x21   : > { %281 = vst [vmem:[%s231_s12 + $0x10] sm:$0xff] %v280_v10  ;;  %v288_v14 = vld [vmem:[%s233_s11 + $0x60] sm:$0xff]  ;;  %v290_v15 = vld [vmem:[%s233_s11 + $0x70] sm:$0xff] }
  0x22   : > { %283 = vst [vmem:[%s231_s12 + $0x18] sm:$0xff] %v282_v11 }
  0x23   : > { %285 = vst [vmem:[%s231_s12 + $0x20] sm:$0xff] %v284_v12 }
  0x24   : > { %287 = vst [vmem:[%s231_s12 + $0x28] sm:$0xff] %v286_v13 }
  0x25   : > { %289 = vst [vmem:[%s231_s12 + $0x30] sm:$0xff] %v288_v14 }
  0x26   : > { %291 = vst [vmem:[%s231_s12 + $0x38] sm:$0xff] %v290_v15 }
  0x27 PF: > { %p652_p7 = scmp.ge.s32.totalorder %s721_s17, 1  ;;  %p296_p8 = scmp.lt.s32.totalorder %s721_s17, 3 }
  0x29   : > { %p297_p9 = pnand %p652_p7, %p296_p8 }
  0x2a   : > { %s303_s13 = sand.u32 (!%p297_p9), 1, %s713_s15  }
  0x2b   : > { %300 = sbr.rel (%p297_p9) target bundleno = 541 (0x21d), region = 104  ;;  %s805_s14 = sshll.u32 (!%p297_p9), %s303_s13, 6 }
  0x2c   : > { %s305_s20 = scalar_lea.vmem (!%p297_p9), [#allocation2], %s805_s14  ;;  %s312_s7 = scalar_lea.vmem (!%p297_p9), [#allocation3], %s805_s14 }
  0x2d   : > { %s337_s8 = scalar_lea.vmem (!%p297_p9), [#allocation4], %s805_s14 }
  0x30   : > { %vm346_vm0 = vcmask 130048   ;;  %v338_v16 = vld [vmem:[%s305_s20] sm:$0xff]  ;;  %v339_v17 = vld [vmem:[%s305_s20 + $0x8] sm:$0xff]  ;;  %v340_v18 = vld [vmem:[%s305_s20 + $0x10] sm:$0xff]  ;;  %v723_v39 = vmov 1024.0   ;;  %s657_s9 = sshll.u32 (%p783_p5), %s644_s18, 3 }
  0x31   : > { %v341_v19 = vld [vmem:[%s305_s20 + $0x18] sm:$0xff]  ;;  %v347_v20 = vsel %vm346_vm0, %v338_v16, 0.0  ;;  %v348_v21 = vsel %vm346_vm0, %v339_v17, 0.0  ;;  %v350_v22 = vsel %vm346_vm0, %v340_v18, 0.0  ;;  %v342_v23 = vld [vmem:[%s305_s20 + $0x20] sm:$0xff]  ;;  %v343_v26 = vld [vmem:[%s305_s20 + $0x28] sm:$0xff]  ;;  %695 = vrcp.f32 %v723_v39  ;;  %s508_s12 = scalar_lea.vmem (%p783_p5), %s865_s4, %s657_s9 }
  0x32   : > { %v349_v24 = vadd.f32 %v348_v21, %v347_v20  ;;  %v352_v25 = vsel %vm346_vm0, %v341_v19, 0.0  ;;  %v354_v28 = vsel %vm346_vm0, %v342_v23, 0.0  ;;  %v344_v29 = vld [vmem:[%s305_s20 + $0x30] sm:$0xff]  ;;  %v356_v31 = vsel %vm346_vm0, %v343_v26, 0.0  ;;  %v345_v32 = vld [vmem:[%s305_s20 + $0x38] sm:$0xff] }
  0x33   : > { %v358_v34 = vsel %vm346_vm0, %v344_v29, 0.0  ;;  %v360_v36 = vsel %vm346_vm0, %v345_v32, 0.0 }
  0x34   : > { %v351_v27 = vadd.f32 %v350_v22, %v349_v24 }
  0x36   : > { %v353_v30 = vadd.f32 %v352_v25, %v351_v27 }
  0x37   : > { %v696_v40 = vpop.eup %695 }
  0x38   : > { %v355_v33 = vadd.f32 %v354_v28, %v353_v30  ;;  %v372_v41 = vmul.f32 1024.0, %v696_v40  ;;  %vm376_vm1 = vweird.f32 %v696_v40 }
  0x3a   : > { %v357_v35 = vadd.f32 %v356_v31, %v355_v33  ;;  %v373_v42 = vsub.f32 1.0, %v372_v41 }
  0x3c   : > { %v359_v37 = vadd.f32 %v358_v34, %v357_v35  ;;  %v374_v46 = vmul.f32 %v696_v40, %v373_v42  ;;  %v694_v42 = vld [vmem:[%s864_s3] ss:$0 sm:$0xff] }
  0x3e   : > { %v361_v38 = vadd.f32 %v360_v36, %v359_v37  ;;  %v375_v49 = vadd.f32 %v696_v40, %v374_v46  ;;  %v693_v36 = vld [vmem:[%s863_s2] ss:$0 sm:$0xff] }
  0x40   : > { %362 = vadd.xlane.f32.xlu0 %v361_v38  ;;  %v377_v52 = vsel %vm376_vm1, %v696_v40, %v375_v49 }
  0xb3   : > { %v363_v43 = vpop.xlane.xlu0 %362 }
  0xb4   : > { %v364_v44 = vrot.slane %v363_v43, 4 }
  0xb6   : > { %v365_v45 = vadd.f32 %v364_v44, %v363_v43 }
  0xb8   : > { %v366_v47 = vrot.slane %v365_v45, 2 }
  0xba   : > { %v367_v48 = vadd.f32 %v366_v47, %v365_v45 }
  0xbc   : > { %v368_v50 = vrot.slane %v367_v48, 1 }
  0xbe   : > { %v369_v51 = vadd.f32 %v368_v50, %v367_v48 }
  0xc0   : > { %660 = vpush %v369_v51 }
  0xc1   : > { %662 = vpush %v377_v52 }
  0xf1   : > { %s661_s15 = spop %660 }
  0xf2   : > { %s816_s21 = spop %662 }
  0xf3   : > { %s379_s23 = smul.f32 %s816_s21, %s661_s15 }
  0xf5   : > { %v380_v53 = vstv %s379_s23 }
  0xf6   : > { %v381_v54 = vsub.f32 %v338_v16, %v380_v53  ;;  %v382_v55 = vsub.f32 %v339_v17, %v380_v53  ;;  %v383_v56 = vsub.f32 %v340_v18, %v380_v53  ;;  %v384_v57 = vsub.f32 %v341_v19, %v380_v53 }
  0xf7   : > { %v385_v58 = vsub.f32 %v342_v23, %v380_v53  ;;  %v386_v62 = vsub.f32 %v343_v26, %v380_v53  ;;  %v387_v3 = vsub.f32 %v344_v29, %v380_v53  ;;  %v388_v7 = vsub.f32 %v345_v32, %v380_v53 }
  0xf8   : > { %v389_v59 = vmul.f32 %v381_v54, %v381_v54  ;;  %v390_v60 = vmul.f32 %v382_v55, %v382_v55  ;;  %v391_v61 = vmul.f32 %v383_v56, %v383_v56  ;;  %v392_v63 = vmul.f32 %v384_v57, %v384_v57 }
  0xf9   : > { %v393_v4 = vmul.f32 %v385_v58, %v385_v58  ;;  %v394_v8 = vmul.f32 %v386_v62, %v386_v62  ;;  %v395_v11 = vmul.f32 %v387_v3, %v387_v3  ;;  %v396_v14 = vmul.f32 %v388_v7, %v388_v7 }
  0xfa   : > { %v397_v0 = vsel %vm346_vm0, %v389_v59, 0.0  ;;  %v398_v1 = vsel %vm346_vm0, %v390_v60, 0.0  ;;  %v400_v5 = vsel %vm346_vm0, %v391_v61, 0.0  ;;  %v402_v9 = vsel %vm346_vm0, %v392_v63, 0.0 }
  0xfb   : > { %v399_v2 = vadd.f32 %v398_v1, %v397_v0  ;;  %v404_v12 = vsel %vm346_vm0, %v393_v4, 0.0  ;;  %v406_v15 = vsel %vm346_vm0, %v394_v8, 0.0  ;;  %v408_v17 = vsel %vm346_vm0, %v395_v11, 0.0  ;;  %v480_v1 = vld [vmem:[%s312_s7 + $0x20] sm:$0xff]  ;;  %v482_v8 = vld [vmem:[%s312_s7 + $0x30] sm:$0xff] }
  0xfc   : > { %v410_v19 = vsel %vm346_vm0, %v396_v14, 0.0 }
  0xfd   : > { %v401_v6 = vadd.f32 %v400_v5, %v399_v2 }
  0xff   : > { %v403_v10 = vadd.f32 %v402_v9, %v401_v6 }
 0x101   : > { %v405_v13 = vadd.f32 %v404_v12, %v403_v10  ;;  %v483_v10 = vld [vmem:[%s312_s7 + $0x38] sm:$0xff] }
 0x103   : > { %v407_v16 = vadd.f32 %v406_v15, %v405_v13 }
 0x105   : > { %v409_v18 = vadd.f32 %v408_v17, %v407_v16 }
 0x107   : > { %v411_v20 = vadd.f32 %v410_v19, %v409_v18 }
 0x109   : > { %412 = vadd.xlane.f32.xlu0 %v411_v20 }
 0x17c   : > { %v413_v21 = vpop.xlane.xlu0 %412 }
 0x17d   : > { %v414_v22 = vrot.slane %v413_v21, 4 }
 0x17f   : > { %v415_v23 = vadd.f32 %v414_v22, %v413_v21 }
 0x181   : > { %v416_v24 = vrot.slane %v415_v23, 2 }
 0x183   : > { %v417_v25 = vadd.f32 %v416_v24, %v415_v23 }
 0x185   : > { %v418_v26 = vrot.slane %v417_v25, 1 }
 0x187   : > { %v419_v27 = vadd.f32 %v418_v26, %v417_v25 }
 0x189   : > { %664 = vpush %v419_v27 }
 0x1ba   : > { %s665_s25 = spop %664 }
 0x1bb   : > { %s429_s26 = smul.f32 %s665_s25, %s816_s21 }
 0x1bd   : > { %s430_s27 = sadd.f32 1e-08, %s429_s26 }
 0x1bf   : > { %v431_v28 = vstv %s430_s27 }
 0x1c0   : > { %697 = vrsqrt.f32 %v431_v28  ;;  %vm438_vm3 = vweird.f32 %v431_v28 }
 0x1c6   : > { %v698_v29 = vpop.eup %697 }
 0x1c7   : > { %v433_v30 = vmul.f32 %v698_v29, %v431_v28  ;;  %vm439_vm2 = vweird.f32 %v698_v29 }
 0x1c8   : > { %vm440_vm4 = vmor %vm438_vm3, %vm439_vm2 }
 0x1c9   : > { %v434_v31 = vmul.f32 %v698_v29, %v433_v30 }
 0x1cb   : > { %v435_v32 = vmul.f32 0.5, %v434_v31 }
 0x1cd   : > { %v436_v33 = vsub.f32 1.5, %v435_v32 }
 0x1cf   : > { %v437_v34 = vmul.f32 %v698_v29, %v436_v33 }
 0x1d1   : > { %v441_v35 = vsel %vm440_vm4, %v698_v29, %v437_v34 }
 0x1d2   : > { %666 = vpush %v441_v35 }
 0x203   : > { %s667_s28 = spop %666 }
 0x204   : > { %v443_v37 = vstv %s667_s28 }
 0x205   : > { %v444_v38 = vmul.f32 %v443_v37, %v381_v54  ;;  %v445_v39 = vmul.f32 %v443_v37, %v382_v55  ;;  %v446_v40 = vmul.f32 %v443_v37, %v383_v56  ;;  %v447_v41 = vmul.f32 %v443_v37, %v384_v57  ;;  %v476_v55 = vld [vmem:[%s312_s7] sm:$0xff]  ;;  %v477_v56 = vld [vmem:[%s312_s7 + $0x8] sm:$0xff]  ;;  %v478_v57 = vld [vmem:[%s312_s7 + $0x10] sm:$0xff] }
 0x206   : > { %v448_v43 = vmul.f32 %v443_v37, %v385_v58  ;;  %v449_v44 = vmul.f32 %v443_v37, %v386_v62  ;;  %v450_v45 = vmul.f32 %v443_v37, %v387_v3  ;;  %v451_v46 = vmul.f32 %v443_v37, %v388_v7  ;;  %v479_v62 = vld [vmem:[%s312_s7 + $0x18] sm:$0xff]  ;;  %v481_v3 = vld [vmem:[%s312_s7 + $0x28] sm:$0xff] }
 0x207   : > { %v456_v47 = vmul.f32 %v693_v36, %v444_v38  ;;  %v457_v48 = vmul.f32 %v693_v36, %v445_v39  ;;  %v458_v49 = vmul.f32 %v693_v36, %v446_v40  ;;  %v459_v50 = vmul.f32 %v693_v36, %v447_v41 }
 0x208   : > { %v460_v51 = vmul.f32 %v693_v36, %v448_v43  ;;  %v461_v52 = vmul.f32 %v693_v36, %v449_v44  ;;  %v462_v53 = vmul.f32 %v693_v36, %v450_v45  ;;  %v463_v54 = vmul.f32 %v693_v36, %v451_v46 }
 0x209   : > { %v468_v59 = vadd.f32 %v694_v42, %v456_v47  ;;  %v469_v60 = vadd.f32 %v694_v42, %v457_v48  ;;  %v470_v61 = vadd.f32 %v694_v42, %v458_v49  ;;  %v471_v58 = vadd.f32 %v694_v42, %v459_v50 }
 0x20a   : > { %v472_v63 = vadd.f32 %v694_v42, %v460_v51  ;;  %v473_v0 = vadd.f32 %v694_v42, %v461_v52  ;;  %v474_v2 = vadd.f32 %v694_v42, %v462_v53  ;;  %v475_v7 = vadd.f32 %v694_v42, %v463_v54 }
 0x20b   : > { %v484_v4 = vadd.f32 %v476_v55, %v468_v59  ;;  %v485_v5 = vadd.f32 %v477_v56, %v469_v60  ;;  %v486_v6 = vadd.f32 %v478_v57, %v470_v61  ;;  %v487_v9 = vadd.f32 %v479_v62, %v471_v58 }
 0x20c   : > { %v488_v11 = vadd.f32 %v480_v1, %v472_v63  ;;  %v489_v12 = vadd.f32 %v481_v3, %v473_v0  ;;  %v490_v13 = vadd.f32 %v482_v8, %v474_v2  ;;  %v491_v14 = vadd.f32 %v483_v10, %v475_v7 }
 0x20d   : > { %492 = vst.msk [vmem:[%s337_s8] sm:$0xff] %vm346_vm0, %v484_v4 }
 0x20e   : > { %493 = vst.msk [vmem:[%s337_s8 + $0x8] sm:$0xff] %vm346_vm0, %v485_v5 }
 0x20f   : > { %494 = vst.msk [vmem:[%s337_s8 + $0x10] sm:$0xff] %vm346_vm0, %v486_v6 }
 0x210   : > { %495 = vst.msk [vmem:[%s337_s8 + $0x18] sm:$0xff] %vm346_vm0, %v487_v9  ;;  %506 = sbr.rel (!%p783_p5) target bundleno = 541 (0x21d), region = 116 }
 0x211   : > { %496 = vst.msk [vmem:[%s337_s8 + $0x20] sm:$0xff] %vm346_vm0, %v488_v11 }
 0x212   : > { %497 = vst.msk [vmem:[%s337_s8 + $0x28] sm:$0xff] %vm346_vm0, %v489_v12 }
 0x213   : > { %498 = vst.msk [vmem:[%s337_s8 + $0x30] sm:$0xff] %vm346_vm0, %v490_v13 }
 0x214   : > { %499 = vst.msk [vmem:[%s337_s8 + $0x38] sm:$0xff] %vm346_vm0, %v491_v14  ;;  %v551_v15 = vld [vmem:[%s337_s8] sm:$0xff] (%p783_p5) }
 0x215   : > { %v553_v16 = vld [vmem:[%s337_s8 + $0x8] sm:$0xff]  ;;  %552 = vst [vmem:[%s508_s12] sm:$0xff] %v551_v15 }
 0x216   : > { %v555_v17 = vld [vmem:[%s337_s8 + $0x10] sm:$0xff]  ;;  %554 = vst [vmem:[%s508_s12 + $0x10] sm:$0xff] %v553_v16 }
 0x217   : > { %v557_v18 = vld [vmem:[%s337_s8 + $0x18] sm:$0xff]  ;;  %556 = vst [vmem:[%s508_s12 + $0x20] sm:$0xff] %v555_v17 }
 0x218   : > { %v559_v19 = vld [vmem:[%s337_s8 + $0x20] sm:$0xff]  ;;  %558 = vst [vmem:[%s508_s12 + $0x30] sm:$0xff] %v557_v18 }
 0x219   : > { %v561_v20 = vld [vmem:[%s337_s8 + $0x28] sm:$0xff]  ;;  %560 = vst [vmem:[%s508_s12 + $0x40] sm:$0xff] %v559_v19 }
 0x21a   : > { %v563_v21 = vld [vmem:[%s337_s8 + $0x30] sm:$0xff]  ;;  %562 = vst [vmem:[%s508_s12 + $0x50] sm:$0xff] %v561_v20 }
 0x21b   : > { %v565_v22 = vld [vmem:[%s337_s8 + $0x38] sm:$0xff]  ;;  %564 = vst [vmem:[%s508_s12 + $0x60] sm:$0xff] %v563_v21 }
 0x21c   : > { %566 = vst [vmem:[%s508_s12 + $0x70] sm:$0xff] %v565_v22 }
 0x21d PF: > { %p11_p10 = scmp.ge.s32.totalorder %s766_s19, 4   ;;  %s868_s15 = smov %s717_s16 }
 0x21e   : > { %s869_s16 = smov %s777_s22  ;;  %s870_s17 = smov %s766_s19 }
 0x21f   :  { %13 = sbr.rel (!%p11_p10) target bundleno = 2 (0x2), region = 193 }

// kernel: dual_rnn_block.4
= control target key start
LH: loop header
LB: loop body
LE: loop exit
PB: predicated region body
PF: predicated region fallthrough
CT: control target
= control target key end

     0   :  { %vm49_vm0 = vcmask 130048   ;;  %v1472_v11 = vmov 0.0   ;;  %s1473_s19 = smov 64   ;;  %s1474_s20 = smov 32   ;;  %vm181_vm9 = vcmask 261120   ;;  %s1930_s1 = inlined_call_operand.vmem [shape: f32[16,128], index: 1, kind: input, shape index: {}]   ;;  %s1931_s0 = inlined_call_operand.vmem [shape: f32[8,16,16], index: 0, kind: input, shape index: {}]   ;;  %s1932_s2 = inlined_call_operand.vmem [shape: f32[32,128], index: 2, kind: input, shape index: {}]   ;;  %s1933_s3 = inlined_call_operand.vmem [shape: f32[1,128], index: 3, kind: input, shape index: {}]   ;;  %s1934_s4 = inlined_call_operand.vmem [shape: f32[32,16], index: 4, kind: input, shape index: {}]   ;;  %s1935_s5 = inlined_call_operand.vmem [shape: f32[1,16], index: 5, kind: input, shape index: {}]   ;;  %s1936_s6 = inlined_call_operand.vmem [shape: f32[8,16,16], index: 6, kind: output, shape index: {}]  }
   0x1   :  { %v24_v0 = vld [vmem:[%s1930_s1 + $0x8] sm:$0xff]  ;;  %v23_v1 = vld [vmem:[%s1930_s1] sm:$0xff]  ;;  %v1522_v3 = vld [vmem:[%s1932_s2 + $0x18] sm:$0xff] }
   0x2   :  { %1332 = vmatpush.msra.mxu2 %v24_v0  ;;  %v43_v2 = vld [vmem:[%s1931_s0 + $0x68] sm:$0xff]  ;;  %112 = vmatpush.msra.mxu0 %v24_v0  ;;  %v30_v4 = vld [vmem:[%s1931_s0] sm:$0xff]  ;;  %v1533_v5 = vld [vmem:[%s1932_s2 + $0x10] sm:$0xff] }
   0x3   :  { %430 = vmatpush.msra.mxu3 %v1522_v3  ;;  %547 = vmatpush.msra.mxu1 %v1522_v3  ;;  %v1541_v6 = vld [vmem:[%s1932_s2 + $0x8] sm:$0xff]  ;;  %v1549_v7 = vld [vmem:[%s1932_s2] sm:$0xff]  ;;  %v44_v8 = vld [vmem:[%s1931_s0 + $0x70] sm:$0xff] }
   0x4   :  { %1333 = vmatpush.msra.mxu2 %v23_v1  ;;  %113 = vmatpush.msra.mxu0 %v23_v1  ;;  %v31_v9 = vld [vmem:[%s1931_s0 + $0x8] sm:$0xff]  ;;  %v45_v10 = vld [vmem:[%s1931_s0 + $0x78] sm:$0xff]  ;;  %v1593_v16 = vld [vmem:[%s1933_s3] ss:$0 sm:$0xff] }
   0x5   :  { %1283 = vmatmul.msk.f32.vlgmr.msra.gmra.mxu2 %vm49_vm0, %v43_v2  ;;  %1270 = vmatmul.msk.f32.vlgmr.msra.gmra.mxu0 %vm49_vm0, %v30_v4 }
   0x6   :  { %197 = vmatpush.msrb.mxu2 %v1522_v3  ;;  %431 = vmatpush.msra.mxu3 %v1533_v5 }
   0x7   :  { %548 = vmatpush.msra.mxu1 %v1533_v5 }
   0x8   :  { %198 = vmatpush.msrb.mxu2 %v1533_v5  ;;  %432 = vmatpush.msra.mxu3 %v1541_v6 }
   0x9   :  { %549 = vmatpush.msra.mxu1 %v1541_v6 }
   0xa   :  { %199 = vmatpush.msrb.mxu2 %v1541_v6  ;;  %433 = vmatpush.msra.mxu3 %v1549_v7 }
   0xb   :  { %550 = vmatpush.msra.mxu1 %v1549_v7 }
   0xc   :  { %781 = vmatpush.msrb.mxu3 %v1522_v3  ;;  %200 = vmatpush.msrb.mxu2 %v1549_v7 }
   0xd   :  { %898 = vmatpush.msrb.mxu1 %v1522_v3  ;;  %1284 = vmatmul.msk.f32.gmra.mxu2 %vm49_vm0, %v44_v8  ;;  %v32_v8 = vld [vmem:[%s1931_s0 + $0x10] sm:$0xff] }
   0xe   :  { %1271 = vmatmul.msk.f32.gmra.mxu0 %vm49_vm0, %v31_v9  ;;  %313 = vmatpush.msra.mxu2 %v1522_v3  ;;  %v33_v9 = vld [vmem:[%s1931_s0 + $0x18] sm:$0xff] }
   0xf   :  { %782 = vmatpush.msrb.mxu3 %v1533_v5  ;;  %899 = vmatpush.msrb.mxu1 %v1533_v5 }
  0x10   :  { %314 = vmatpush.msra.mxu2 %v1533_v5 }
  0x11   :  { %783 = vmatpush.msrb.mxu3 %v1541_v6  ;;  %900 = vmatpush.msrb.mxu1 %v1541_v6 }
  0x12   :  { %315 = vmatpush.msra.mxu2 %v1541_v6 }
  0x13   :  { %784 = vmatpush.msrb.mxu3 %v1549_v7  ;;  %901 = vmatpush.msrb.mxu1 %v1549_v7 }
  0x14   :  { %316 = vmatpush.msra.mxu2 %v1549_v7 }
  0x15   :  { %1285 = vmatmul.msk.f32.gmra.mxu2 %vm49_vm0, %v45_v10 }
  0x16   :  { %1272 = vmatmul.msk.f32.gmra.mxu0 %vm49_vm0, %v32_v8 }
  0x1d   :  { %201 = vmatmul.f32.vlgmr.msrb.gmra.mxu2 %v1472_v11 }
  0x1e   :  { %664 = vmatpush.msrb.mxu2 %v1522_v3  ;;  %1273 = vmatmul.msk.f32.gmra.mxu0 %vm49_vm0, %v33_v9 }
  0x20   :  { %665 = vmatpush.msrb.mxu2 %v1533_v5 }
  0x22   :  { %666 = vmatpush.msrb.mxu2 %v1541_v6 }
  0x24   :  { %667 = vmatpush.msrb.mxu2 %v1549_v7 }
  0x25   :  { %204 = vmatmul.f32.gmra.mxu2 %v1472_v11 }
  0x82   :  { %v115_v15 = vpop.f32.mrf.mxu0 }
  0x83   :  { %v116_v17 = vadd.f32 %v1593_v16, %v115_v15 }
  0x88   :  { %v1584_v12 = vpop.f32.mrf.mxu2 }
  0x8b   :  { %v118_v20 = vpop.f32.mrf.mxu0 }
  0x8c   :  { %v119_v21 = vadd.f32 %v1593_v16, %v118_v20 }
  0x90   :  { %v1586_v13 = vpop.f32.mrf.mxu2 }
  0x93   :  { %v121_v15 = vpop.f32.mrf.mxu0 }
  0x98   :  { %v1588_v14 = vpop.f32.mrf.mxu2 }
  0x9b   :  { %v124_v20 = vpop.f32.mrf.mxu0 }
  0xa0   :  { %v202_v18 = vpop.f32.mrf.mxu2 }
  0xa1   :  { %v208_v19 = vadd.f32 %v202_v18, %v116_v17  ;;  %v122_v17 = vadd.f32 %v1593_v16, %v121_v15 }
  0xa3   :  { %1343 = vtanh.f32 %v208_v19  ;;  %v1286_v26 = vmul.f32 -1.442695, %v208_v19 }
  0xa8   :  { %v205_v22 = vpop.f32.mrf.mxu2 }
  0xa9   :  { %v1344_v23 = vpop.eup %1343  ;;  %v209_v24 = vadd.f32 %v205_v22, %v119_v21 }
  0xaa   :  { %254 = vrot.lane.b32.xlu0 %v1344_v23, %s1473_s19 }
  0xab   :  { %1345 = vtanh.f32 %v209_v24  ;;  %v1287_v27 = vmul.f32 -1.442695, %v209_v24 }
  0xac   :  { %1347 = vpow2.f32 %v1286_v26 }
  0xad   :  { %1349 = vpow2.f32 %v1287_v27 }
  0xb1   :  { %v1346_v25 = vpop.eup %1345 }
  0xb2   :  { %256 = vrot.lane.b32.xlu0 %v1346_v25, %s1473_s19  ;;  %v1348_v28 = vpop.eup %1347 }
  0xb3   :  { %v216_v29 = vadd.f32 1.0, %v1348_v28  ;;  %v1350_v30 = vpop.eup %1349 }
  0xb4   :  { %v217_v31 = vadd.f32 1.0, %v1350_v30 }
  0xb5   :  { %1351 = vrcp.f32 %v216_v29  ;;  %v229_v40 = vand.u32 2147483648, %v216_v29  ;;  %vm223_vm2 = vweird.f32 %v216_v29  ;;  %v227_v41 = vand.u32 2147483647, %v216_v29 }
  0xb6   :  { %1353 = vrcp.f32 %v217_v31  ;;  %v244_v49 = vand.u32 2147483648, %v217_v31  ;;  %vm238_vm6 = vweird.f32 %v217_v31  ;;  %v242_v50 = vand.u32 2147483647, %v217_v31 }
  0xb7   :  { %v230_v44 = vor.u32 1.1754944e-38, %v229_v40  ;;  %vm228_vm4 = vcmp.eq.f32.partialorder %v227_v41, 8.507059e+37 }
  0xb8   :  { %v245_v52 = vor.u32 1.1754944e-38, %v244_v49  ;;  %vm243_vm8 = vcmp.eq.f32.partialorder %v242_v50, 8.507059e+37 }
  0xbb   :  { %v1352_v32 = vpop.eup %1351 }
  0xbc   :  { %v219_v33 = vmul.f32 %v1352_v32, %v216_v29  ;;  %v1354_v35 = vpop.eup %1353  ;;  %vm224_vm1 = vweird.f32 %v1352_v32 }
  0xbd   :  { %v234_v37 = vmul.f32 %v1354_v35, %v217_v31  ;;  %vm225_vm3 = vmor %vm223_vm2, %vm224_vm1  ;;  %vm239_vm5 = vweird.f32 %v1354_v35 }
  0xbe   :  { %v220_v34 = vsub.f32 1.0, %v219_v33  ;;  %vm240_vm7 = vmor %vm238_vm6, %vm239_vm5 }
  0xbf   :  { %v235_v39 = vsub.f32 1.0, %v234_v37 }
  0xc0   :  { %v221_v36 = vmul.f32 %v1352_v32, %v220_v34 }
  0xc1   :  { %v236_v43 = vmul.f32 %v1354_v35, %v235_v39 }
  0xc2   :  { %v222_v38 = vadd.f32 %v1352_v32, %v221_v36 }
  0xc3   :  { %v237_v48 = vadd.f32 %v1354_v35, %v236_v43 }
  0xc4   :  { %v226_v42 = vsel %vm225_vm3, %v1352_v32, %v222_v38 }
  0xc5   :  { %v231_v46 = vsel %vm228_vm4, %v230_v44, %v226_v42  ;;  %v241_v51 = vsel %vm240_vm7, %v1354_v35, %v237_v48 }
  0xc6   :  { %v246_v53 = vsel %vm243_vm8, %v245_v52, %v241_v51  ;;  %v250_v56 = vmul.f32 0.0, %v231_v46 }
  0xc7   :  { %v251_v59 = vmul.f32 0.0, %v246_v53 }
 0x11c   :  { %v255_v45 = vpop.permute.xlu0 %254 }
 0x11d   :  { %v260_v47 = vmul.f32 %v255_v45, %v231_v46 }
 0x11f   :  { %264 = vrot.lane.b32.xlu1 %v260_v47, %s1474_s20 }
 0x124   :  { %v257_v54 = vpop.permute.xlu0 %256 }
 0x125   :  { %v261_v55 = vmul.f32 %v257_v54, %v246_v53 }
 0x127   :  { %266 = vrot.lane.b32.xlu1 %v261_v55, %s1474_s20 }
 0x191   :  { %v265_v57 = vpop.permute.xlu1 %264 }
 0x192   :  { %v1601_v58 = vadd.f32 %v265_v57, %v250_v56 }
 0x194   :  { %1355 = vtanh.f32 %v1601_v58 }
 0x199   :  { %v267_v60 = vpop.permute.xlu1 %266 }
 0x19a   :  { %v1356_v61 = vpop.eup %1355  ;;  %v1604_v62 = vadd.f32 %v267_v60, %v251_v59 }
 0x19b   :  { %276 = vrot.lane.b32.xlu2 %v1356_v61, %s1473_s19 }
 0x19c   :  { %1357 = vtanh.f32 %v1604_v62 }
 0x1a2   :  { %v1358_v63 = vpop.eup %1357 }
 0x1a3   :  { %278 = vrot.lane.b32.xlu2 %v1358_v63, %s1473_s19 }
 0x1f5   :  { %v277_v0 = vpop.permute.xlu2 %276 }
 0x1f6   :  { %v282_v1 = vmul.f32 %v277_v0, %v231_v46 }
 0x1f8   :  { %286 = vrot.lane.b32.xlu0 %v282_v1, %s1474_s20 }
 0x1fd   :  { %v279_v2 = vpop.permute.xlu2 %278 }
 0x1fe   :  { %v283_v4 = vmul.f32 %v279_v2, %v246_v53  ;;  %v35_v2 = vld [vmem:[%s1931_s0 + $0x28] sm:$0xff] }
 0x200   :  { %288 = vrot.lane.b32.xlu1 %v283_v4, %s1474_s20 }
 0x26a   :  { %v287_v10 = vpop.permute.xlu0 %286 }
 0x26b   :  { %292 = vst.msk [vmem:[#allocation3] sm:$0xff] %vm181_vm9, %v287_v10  ;;  %1288 = vmatmul.msk.f32.vlgmr.msra.gmra.mxu2 %vm181_vm9, %v287_v10 }
 0x26c   :  { %1015 = vmatpush.msra.mxu2 %v1522_v3  ;;  %v125_v3 = vadd.f32 %v1593_v16, %v124_v20 }
 0x26e   :  { %1016 = vmatpush.msra.mxu2 %v1533_v5 }
 0x270   :  { %1017 = vmatpush.msra.mxu2 %v1541_v6 }
 0x272   :  { %v289_v11 = vpop.permute.xlu1 %288  ;;  %1018 = vmatpush.msra.mxu2 %v1549_v7 }
 0x273   :  { %293 = vst.msk [vmem:[#allocation3 + $0x8] sm:$0xff] %vm181_vm9, %v289_v11  ;;  %1289 = vmatmul.msk.f32.gmra.mxu2 %vm181_vm9, %v289_v11 }
 0x2ee   :  { %v318_v18 = vpop.f32.mrf.mxu2 }
 0x2ef   :  { %v324_v19 = vadd.f32 %v318_v18, %v122_v17 }
 0x2f1   :  { %1359 = vtanh.f32 %v324_v19  ;;  %v1290_v7 = vmul.f32 -1.442695, %v324_v19 }
 0x2f6   :  { %v321_v21 = vpop.f32.mrf.mxu2 }
 0x2f7   :  { %v1360_v5 = vpop.eup %1359  ;;  %v325_v22 = vadd.f32 %v321_v21, %v125_v3 }
 0x2f8   :  { %370 = vrot.lane.b32.xlu2 %v1360_v5, %s1473_s19 }
 0x2f9   :  { %1361 = vtanh.f32 %v325_v22  ;;  %v1291_v28 = vmul.f32 -1.442695, %v325_v22 }
 0x2fa   :  { %1363 = vpow2.f32 %v1290_v7 }
 0x2ff   :  { %v1362_v6 = vpop.eup %1361 }
 0x300   :  { %372 = vrot.lane.b32.xlu0 %v1362_v6, %s1473_s19  ;;  %v1364_v23 = vpop.eup %1363 }
 0x301   :  { %v332_v24 = vadd.f32 1.0, %v1364_v23 }
 0x303   :  { %1365 = vrcp.f32 %v332_v24  ;;  %v345_v31 = vand.u32 2147483648, %v332_v24  ;;  %vm339_vm11 = vweird.f32 %v332_v24  ;;  %v343_v32 = vand.u32 2147483647, %v332_v24 }
 0x304   :  { %1367 = vpow2.f32 %v1291_v28 }
 0x305   :  { %v346_v35 = vor.u32 1.1754944e-38, %v345_v31  ;;  %vm344_vm13 = vcmp.eq.f32.partialorder %v343_v32, 8.507059e+37 }
 0x309   :  { %v1366_v25 = vpop.eup %1365 }
 0x30a   :  { %v335_v26 = vmul.f32 %v1366_v25, %v332_v24  ;;  %vm340_vm10 = vweird.f32 %v1366_v25  ;;  %v1368_v33 = vpop.eup %1367 }
 0x30b   :  { %vm341_vm12 = vmor %vm339_vm11, %vm340_vm10  ;;  %v333_v36 = vadd.f32 1.0, %v1368_v33 }
 0x30c   :  { %v336_v27 = vsub.f32 1.0, %v335_v26 }
 0x30d   :  { %1369 = vrcp.f32 %v333_v36  ;;  %v360_v45 = vand.u32 2147483648, %v333_v36  ;;  %vm354_vm15 = vweird.f32 %v333_v36  ;;  %v358_v46 = vand.u32 2147483647, %v333_v36 }
 0x30e   :  { %v337_v29 = vmul.f32 %v1366_v25, %v336_v27 }
 0x30f   :  { %v361_v48 = vor.u32 1.1754944e-38, %v360_v45  ;;  %vm359_vm2 = vcmp.eq.f32.partialorder %v358_v46, 8.507059e+37 }
 0x310   :  { %v338_v30 = vadd.f32 %v1366_v25, %v337_v29 }
 0x312   :  { %v342_v34 = vsel %vm341_vm12, %v1366_v25, %v338_v30 }
 0x313   :  { %v347_v37 = vsel %vm344_vm13, %v346_v35, %v342_v34  ;;  %v1370_v40 = vpop.eup %1369 }
 0x314   :  { %v350_v41 = vmul.f32 %v1370_v40, %v333_v36  ;;  %vm355_vm14 = vweird.f32 %v1370_v40  ;;  %v366_v52 = vmul.f32 %v347_v37, %v1601_v58 }
 0x315   :  { %vm356_vm1 = vmor %vm354_vm15, %vm355_vm14 }
 0x316   :  { %v351_v42 = vsub.f32 1.0, %v350_v41 }
 0x318   :  { %v352_v43 = vmul.f32 %v1370_v40, %v351_v42 }
 0x31a   :  { %v353_v44 = vadd.f32 %v1370_v40, %v352_v43 }
 0x31c   :  { %v357_v47 = vsel %vm356_vm1, %v1370_v40, %v353_v44 }
 0x31d   :  { %v362_v50 = vsel %vm359_vm2, %v361_v48, %v357_v47 }
 0x31e   :  { %v367_v55 = vmul.f32 %v362_v50, %v1604_v62  ;;  %v34_v62 = vld [vmem:[%s1931_s0 + $0x20] sm:$0xff] }
 0x31f   :  { %1274 = vmatmul.msk.f32.gmra.mxu0 %vm49_vm0, %v34_v62 }
 0x327   :  { %1275 = vmatmul.msk.f32.gmra.mxu0 %vm49_vm0, %v35_v2 }
 0x352   :  { %v371_v38 = vpop.permute.xlu2 %370 }
 0x353   :  { %v376_v39 = vmul.f32 %v371_v38, %v347_v37 }
 0x355   :  { %380 = vrot.lane.b32.xlu1 %v376_v39, %s1474_s20 }
 0x372   :  { %v373_v49 = vpop.permute.xlu0 %372 }
 0x373   :  { %v377_v51 = vmul.f32 %v373_v49, %v362_v50 }
 0x375   :  { %382 = vrot.lane.b32.xlu2 %v377_v51, %s1474_s20 }
 0x39c   :  { %v127_v8 = vpop.f32.mrf.mxu0 }
 0x39d   :  { %v128_v9 = vadd.f32 %v1593_v16, %v127_v8 }
 0x3a4   :  { %v130_v17 = vpop.f32.mrf.mxu0 }
 0x3a5   :  { %v131_v18 = vadd.f32 %v1593_v16, %v130_v17 }
 0x3c7   :  { %v381_v53 = vpop.permute.xlu1 %380 }
 0x3c8   :  { %v1634_v54 = vadd.f32 %v381_v53, %v366_v52 }
 0x3ca   :  { %1371 = vtanh.f32 %v1634_v54 }
 0x3cf   :  { %v383_v56 = vpop.permute.xlu2 %382 }
 0x3d0   :  { %v1372_v57 = vpop.eup %1371  ;;  %v1638_v59 = vadd.f32 %v383_v56, %v367_v55 }
 0x3d1   :  { %392 = vrot.lane.b32.xlu0 %v1372_v57, %s1473_s19 }
 0x3d2   :  { %1373 = vtanh.f32 %v1638_v59 }
 0x3d8   :  { %v1374_v60 = vpop.eup %1373 }
 0x3d9   :  { %394 = vrot.lane.b32.xlu1 %v1374_v60, %s1473_s19  ;;  %v36_v60 = vld [vmem:[%s1931_s0 + $0x30] sm:$0xff] }
 0x3da   :  { %1276 = vmatmul.msk.f32.gmra.mxu0 %vm49_vm0, %v36_v60 }
 0x443   :  { %v393_v61 = vpop.permute.xlu0 %392 }
 0x444   :  { %v398_v58 = vmul.f32 %v393_v61, %v347_v37 }
 0x446   :  { %402 = vrot.lane.b32.xlu2 %v398_v58, %s1474_s20  ;;  %v37_v58 = vld [vmem:[%s1931_s0 + $0x38] sm:$0xff] }
 0x447   :  { %1277 = vmatmul.msk.f32.gmra.mxu0 %vm49_vm0, %v37_v58 }
 0x44b   :  { %v395_v63 = vpop.permute.xlu1 %394 }
 0x44c   :  { %v399_v0 = vmul.f32 %v395_v63, %v362_v50 }
 0x44e   :  { %404 = vrot.lane.b32.xlu0 %v399_v0, %s1474_s20 }
 0x457   :  { %v133_v62 = vpop.f32.mrf.mxu0 }
 0x4a0   :  { %v403_v1 = vpop.permute.xlu2 %402 }
 0x4a1   :  { %409 = vst.msk [vmem:[#allocation3 + $0x10] sm:$0xff] %vm181_vm9, %v403_v1  ;;  %1292 = vmatmul.msk.f32.vlgmr.msra.gmra.mxu3 %vm181_vm9, %v403_v1  ;;  %v134_v1 = vadd.f32 %v1593_v16, %v133_v62 }
 0x4c0   :  { %v405_v4 = vpop.permute.xlu0 %404 }
 0x4c1   :  { %410 = vst.msk [vmem:[#allocation3 + $0x18] sm:$0xff] %vm181_vm9, %v405_v4  ;;  %1293 = vmatmul.msk.f32.gmra.mxu3 %vm181_vm9, %v405_v4 }
 0x4c4   :  { %v136_v8 = vpop.f32.mrf.mxu0 }
 0x524   :  { %v435_v10 = vpop.f32.mrf.mxu3 }
 0x525   :  { %v441_v11 = vadd.f32 %v435_v10, %v128_v9  ;;  %v137_v9 = vadd.f32 %v1593_v16, %v136_v8 }
 0x527   :  { %1375 = vtanh.f32 %v441_v11  ;;  %v1294_v21 = vmul.f32 -1.442695, %v441_v11 }
 0x52d   :  { %v1376_v15 = vpop.eup %1375 }
 0x52e   :  { %487 = vrot.lane.b32.xlu1 %v1376_v15, %s1473_s19 }
 0x544   :  { %v438_v19 = vpop.f32.mrf.mxu3 }
 0x545   :  { %v442_v20 = vadd.f32 %v438_v19, %v131_v18 }
 0x547   :  { %1377 = vtanh.f32 %v442_v20  ;;  %v1295_v5 = vmul.f32 -1.442695, %v442_v20 }
 0x548   :  { %1379 = vpow2.f32 %v1294_v21 }
 0x549   :  { %1381 = vpow2.f32 %v1295_v5 }
 0x54d   :  { %v1378_v3 = vpop.eup %1377 }
 0x54e   :  { %489 = vrot.lane.b32.xlu2 %v1378_v3, %s1473_s19  ;;  %v1380_v22 = vpop.eup %1379 }
 0x54f   :  { %v449_v6 = vadd.f32 1.0, %v1380_v22  ;;  %v1382_v7 = vpop.eup %1381 }
 0x550   :  { %v450_v23 = vadd.f32 1.0, %v1382_v7 }
 0x551   :  { %1383 = vrcp.f32 %v449_v6  ;;  %v462_v32 = vand.u32 2147483648, %v449_v6  ;;  %vm456_vm4 = vweird.f32 %v449_v6  ;;  %v460_v33 = vand.u32 2147483647, %v449_v6 }
 0x552   :  { %1385 = vrcp.f32 %v450_v23  ;;  %v477_v41 = vand.u32 2147483648, %v450_v23  ;;  %vm471_vm8 = vweird.f32 %v450_v23  ;;  %v475_v42 = vand.u32 2147483647, %v450_v23 }
 0x553   :  { %v463_v36 = vor.u32 1.1754944e-38, %v462_v32  ;;  %vm461_vm6 = vcmp.eq.f32.partialorder %v460_v33, 8.507059e+37 }
 0x554   :  { %v478_v44 = vor.u32 1.1754944e-38, %v477_v41  ;;  %vm476_vm11 = vcmp.eq.f32.partialorder %v475_v42, 8.507059e+37 }
 0x557   :  { %v1384_v24 = vpop.eup %1383 }
 0x558   :  { %v452_v25 = vmul.f32 %v1384_v24, %v449_v6  ;;  %v1386_v27 = vpop.eup %1385  ;;  %vm457_vm3 = vweird.f32 %v1384_v24 }
 0x559   :  { %v467_v29 = vmul.f32 %v1386_v27, %v450_v23  ;;  %vm458_vm5 = vmor %vm456_vm4, %vm457_vm3  ;;  %vm472_vm7 = vweird.f32 %v1386_v27 }
 0x55a   :  { %v453_v26 = vsub.f32 1.0, %v452_v25  ;;  %vm473_vm10 = vmor %vm471_vm8, %vm472_vm7 }
 0x55b   :  { %v468_v31 = vsub.f32 1.0, %v467_v29 }
 0x55c   :  { %v454_v28 = vmul.f32 %v1384_v24, %v453_v26 }
 0x55d   :  { %v469_v35 = vmul.f32 %v1386_v27, %v468_v31 }
 0x55e   :  { %v455_v30 = vadd.f32 %v1384_v24, %v454_v28 }
 0x55f   :  { %v470_v40 = vadd.f32 %v1386_v27, %v469_v35 }
 0x560   :  { %v459_v34 = vsel %vm458_vm5, %v1384_v24, %v455_v30 }
 0x561   :  { %v464_v38 = vsel %vm461_vm6, %v463_v36, %v459_v34  ;;  %v474_v43 = vsel %vm473_vm10, %v1386_v27, %v470_v40 }
 0x562   :  { %v479_v46 = vsel %vm476_vm11, %v478_v44, %v474_v43  ;;  %v483_v48 = vmul.f32 %v464_v38, %v1634_v54 }
 0x563   :  { %v484_v51 = vmul.f32 %v479_v46, %v1638_v59 }
 0x5a0   :  { %v488_v37 = vpop.permute.xlu1 %487 }
 0x5a1   :  { %v493_v39 = vmul.f32 %v488_v37, %v464_v38 }
 0x5a3   :  { %497 = vrot.lane.b32.xlu0 %v493_v39, %s1474_s20 }
 0x5a8   :  { %v490_v45 = vpop.permute.xlu2 %489 }
 0x5a9   :  { %v494_v47 = vmul.f32 %v490_v45, %v479_v46 }
 0x5ab   :  { %499 = vrot.lane.b32.xlu1 %v494_v47, %s1474_s20 }
 0x615   :  { %v498_v49 = vpop.permute.xlu0 %497 }
 0x616   :  { %v1664_v50 = vadd.f32 %v498_v49, %v483_v48 }
 0x618   :  { %1387 = vtanh.f32 %v1664_v50 }
 0x61d   :  { %v500_v52 = vpop.permute.xlu1 %499 }
 0x61e   :  { %v1388_v53 = vpop.eup %1387  ;;  %v1668_v55 = vadd.f32 %v500_v52, %v484_v51 }
 0x61f   :  { %509 = vrot.lane.b32.xlu2 %v1388_v53, %s1473_s19 }
 0x620   :  { %1389 = vtanh.f32 %v1668_v55 }
 0x626   :  { %v1390_v56 = vpop.eup %1389 }
 0x627   :  { %511 = vrot.lane.b32.xlu0 %v1390_v56, %s1473_s19 }
 0x679   :  { %v510_v57 = vpop.permute.xlu2 %509 }
 0x67a   :  { %v515_v54 = vmul.f32 %v510_v57, %v464_v38 }
 0x67c   :  { %519 = vrot.lane.b32.xlu1 %v515_v54, %s1474_s20  ;;  %v39_v54 = vld [vmem:[%s1931_s0 + $0x48] sm:$0xff] }
 0x699   :  { %v512_v59 = vpop.permute.xlu0 %511 }
 0x69a   :  { %v516_v61 = vmul.f32 %v512_v59, %v479_v46 }
 0x69c   :  { %521 = vrot.lane.b32.xlu2 %v516_v61, %s1474_s20 }
 0x6ee   :  { %v520_v63 = vpop.permute.xlu1 %519 }
 0x6ef   :  { %526 = vst.msk [vmem:[#allocation3 + $0x20] sm:$0xff] %vm181_vm9, %v520_v63  ;;  %1296 = vmatmul.msk.f32.vlgmr.msra.gmra.mxu1 %vm181_vm9, %v520_v63 }
 0x6f6   :  { %v522_v0 = vpop.permute.xlu2 %521 }
 0x6f7   :  { %527 = vst.msk [vmem:[#allocation3 + $0x28] sm:$0xff] %vm181_vm9, %v522_v0  ;;  %1297 = vmatmul.msk.f32.gmra.mxu1 %vm181_vm9, %v522_v0 }
 0x76c   :  { %v552_v2 = vpop.f32.mrf.mxu1 }
 0x76d   :  { %v558_v4 = vadd.f32 %v552_v2, %v134_v1 }
 0x76f   :  { %1391 = vtanh.f32 %v558_v4  ;;  %v1298_v18 = vmul.f32 -1.442695, %v558_v4 }
 0x774   :  { %v555_v10 = vpop.f32.mrf.mxu1 }
 0x775   :  { %v1392_v11 = vpop.eup %1391  ;;  %v559_v15 = vadd.f32 %v555_v10, %v137_v9 }
 0x776   :  { %604 = vrot.lane.b32.xlu0 %v1392_v11, %s1473_s19 }
 0x777   :  { %1393 = vtanh.f32 %v559_v15  ;;  %v1299_v19 = vmul.f32 -1.442695, %v559_v15 }
 0x778   :  { %1395 = vpow2.f32 %v1298_v18 }
 0x779   :  { %1397 = vpow2.f32 %v1299_v19 }
 0x77d   :  { %v1394_v17 = vpop.eup %1393 }
 0x77e   :  { %606 = vrot.lane.b32.xlu1 %v1394_v17, %s1473_s19  ;;  %v1396_v20 = vpop.eup %1395 }
 0x77f   :  { %v566_v3 = vadd.f32 1.0, %v1396_v20  ;;  %v1398_v21 = vpop.eup %1397 }
 0x780   :  { %v567_v5 = vadd.f32 1.0, %v1398_v21 }
 0x781   :  { %1399 = vrcp.f32 %v566_v3  ;;  %v579_v28 = vand.u32 2147483648, %v566_v3  ;;  %vm573_vm13 = vweird.f32 %v566_v3  ;;  %v577_v29 = vand.u32 2147483647, %v566_v3 }
 0x782   :  { %1401 = vrcp.f32 %v567_v5  ;;  %v594_v37 = vand.u32 2147483648, %v567_v5  ;;  %vm588_vm2 = vweird.f32 %v567_v5  ;;  %v592_v38 = vand.u32 2147483647, %v567_v5 }
 0x783   :  { %v580_v32 = vor.u32 1.1754944e-38, %v579_v28  ;;  %vm578_vm15 = vcmp.eq.f32.partialorder %v577_v29, 8.507059e+37 }
 0x784   :  { %v595_v40 = vor.u32 1.1754944e-38, %v594_v37  ;;  %vm593_vm4 = vcmp.eq.f32.partialorder %v592_v38, 8.507059e+37 }
 0x787   :  { %v1400_v22 = vpop.eup %1399 }
 0x788   :  { %v569_v6 = vmul.f32 %v1400_v22, %v566_v3  ;;  %v1402_v23 = vpop.eup %1401  ;;  %vm574_vm12 = vweird.f32 %v1400_v22 }
 0x789   :  { %v584_v25 = vmul.f32 %v1402_v23, %v567_v5  ;;  %vm575_vm14 = vmor %vm573_vm13, %vm574_vm12  ;;  %vm589_vm1 = vweird.f32 %v1402_v23 }
 0x78a   :  { %v570_v7 = vsub.f32 1.0, %v569_v6  ;;  %vm590_vm3 = vmor %vm588_vm2, %vm589_vm1 }
 0x78b   :  { %v585_v27 = vsub.f32 1.0, %v584_v25 }
 0x78c   :  { %v571_v24 = vmul.f32 %v1400_v22, %v570_v7 }
 0x78d   :  { %v586_v31 = vmul.f32 %v1402_v23, %v585_v27 }
 0x78e   :  { %v572_v26 = vadd.f32 %v1400_v22, %v571_v24 }
 0x78f   :  { %v587_v36 = vadd.f32 %v1402_v23, %v586_v31 }
 0x790   :  { %v576_v30 = vsel %vm575_vm14, %v1400_v22, %v572_v26 }
 0x791   :  { %v581_v33 = vsel %vm578_vm15, %v580_v32, %v576_v30  ;;  %v591_v39 = vsel %vm590_vm3, %v1402_v23, %v587_v36 }
 0x792   :  { %v596_v42 = vsel %vm593_vm4, %v595_v40, %v591_v39  ;;  %v600_v44 = vmul.f32 %v581_v33, %v1664_v50 }
 0x793   :  { %v601_v48 = vmul.f32 %v596_v42, %v1668_v55  ;;  %v38_v55 = vld [vmem:[%s1931_s0 + $0x40] sm:$0xff] }
 0x794   :  { %1278 = vmatmul.msk.f32.gmra.mxu0 %vm49_vm0, %v38_v55  ;;  %v41_v55 = vld [vmem:[%s1931_s0 + $0x58] sm:$0xff] }
 0x79c   :  { %1279 = vmatmul.msk.f32.gmra.mxu0 %vm49_vm0, %v39_v54  ;;  %v1130_v54 = vld [vmem:[%s1934_s4 + $0x8] sm:$0xff] }
 0x7e8   :  { %v605_v34 = vpop.permute.xlu0 %604 }
 0x7e9   :  { %v610_v35 = vmul.f32 %v605_v34, %v581_v33 }
 0x7eb   :  { %614 = vrot.lane.b32.xlu2 %v610_v35, %s1474_s20 }
 0x7f0   :  { %v607_v41 = vpop.permute.xlu1 %606 }
 0x7f1   :  { %v611_v43 = vmul.f32 %v607_v41, %v596_v42 }
 0x7f3   :  { %616 = vrot.lane.b32.xlu0 %v611_v43, %s1474_s20 }
 0x811   :  { %v139_v61 = vpop.f32.mrf.mxu0 }
 0x812   :  { %v140_v58 = vadd.f32 %v1593_v16, %v139_v61 }
 0x819   :  { %v142_v62 = vpop.f32.mrf.mxu0 }
 0x81a   :  { %v143_v1 = vadd.f32 %v1593_v16, %v142_v62 }
 0x845   :  { %v615_v45 = vpop.permute.xlu2 %614 }
 0x846   :  { %v1694_v46 = vadd.f32 %v615_v45, %v600_v44 }
 0x848   :  { %1403 = vtanh.f32 %v1694_v46 }
 0x84e   :  { %v1404_v47 = vpop.eup %1403 }
 0x84f   :  { %626 = vrot.lane.b32.xlu1 %v1404_v47, %s1473_s19 }
 0x865   :  { %v617_v49 = vpop.permute.xlu0 %616 }
 0x866   :  { %v1699_v51 = vadd.f32 %v617_v49, %v601_v48 }
 0x868   :  { %1405 = vtanh.f32 %v1699_v51 }
 0x86e   :  { %v1406_v52 = vpop.eup %1405 }
 0x86f   :  { %628 = vrot.lane.b32.xlu2 %v1406_v52, %s1473_s19 }
 0x8c1   :  { %v627_v53 = vpop.permute.xlu1 %626 }
 0x8c2   :  { %v632_v50 = vmul.f32 %v627_v53, %v581_v33 }
 0x8c4   :  { %636 = vrot.lane.b32.xlu0 %v632_v50, %s1474_s20 }
 0x8c9   :  { %v629_v56 = vpop.permute.xlu2 %628 }
 0x8ca   :  { %v633_v57 = vmul.f32 %v629_v56, %v596_v42  ;;  %v1132_v56 = vld [vmem:[%s1934_s4 + $0x18] sm:$0xff] }
 0x8cb   :  { %1334 = vmatpush.msra.mxu3 %v1132_v56  ;;  %1197 = vmatpush.msra.mxu1 %v1132_v56 }
 0x8cc   :  { %638 = vrot.lane.b32.xlu1 %v633_v57, %s1474_s20  ;;  %v1131_v57 = vld [vmem:[%s1934_s4 + $0x10] sm:$0xff] }
 0x8cd   :  { %1335 = vmatpush.msra.mxu3 %v1131_v57  ;;  %1198 = vmatpush.msra.mxu1 %v1131_v57 }
 0x8cf   :  { %1336 = vmatpush.msra.mxu3 %v1130_v54  ;;  %1199 = vmatpush.msra.mxu1 %v1130_v54  ;;  %v42_v54 = vld [vmem:[%s1931_s0 + $0x60] sm:$0xff] }
 0x936   :  { %v637_v60 = vpop.permute.xlu0 %636 }
 0x937   :  { %643 = vst.msk [vmem:[#allocation3 + $0x30] sm:$0xff] %vm181_vm9, %v637_v60  ;;  %1300 = vmatmul.msk.f32.vlgmr.msrb.gmra.mxu2 %vm181_vm9, %v637_v60  ;;  %v1129_v60 = vld [vmem:[%s1934_s4] sm:$0xff] }
 0x938   :  { %1337 = vmatpush.msra.mxu3 %v1129_v60  ;;  %1200 = vmatpush.msra.mxu1 %v1129_v60 }
 0x93e   :  { %v639_v59 = vpop.permute.xlu1 %638 }
 0x93f   :  { %644 = vst.msk [vmem:[#allocation3 + $0x38] sm:$0xff] %vm181_vm9, %v639_v59  ;;  %1301 = vmatmul.msk.f32.gmra.mxu2 %vm181_vm9, %v639_v59 }
 0x9ba   :  { %v669_v63 = vpop.f32.mrf.mxu2 }
 0x9bb   :  { %v675_v0 = vadd.f32 %v669_v63, %v140_v58 }
 0x9bd   :  { %1407 = vtanh.f32 %v675_v0  ;;  %v1302_v10 = vmul.f32 -1.442695, %v675_v0 }
 0x9c2   :  { %v672_v2 = vpop.f32.mrf.mxu2 }
 0x9c3   :  { %v1408_v4 = vpop.eup %1407  ;;  %v676_v8 = vadd.f32 %v672_v2, %v143_v1 }
 0x9c4   :  { %721 = vrot.lane.b32.xlu2 %v1408_v4, %s1473_s19 }
 0x9c5   :  { %1409 = vtanh.f32 %v676_v8  ;;  %v1303_v20 = vmul.f32 -1.442695, %v676_v8 }
 0x9c6   :  { %1411 = vpow2.f32 %v1302_v10 }
 0x9cb   :  { %v1410_v9 = vpop.eup %1409 }
 0x9cc   :  { %723 = vrot.lane.b32.xlu0 %v1410_v9, %s1473_s19  ;;  %v1412_v11 = vpop.eup %1411 }
 0x9cd   :  { %v683_v15 = vadd.f32 1.0, %v1412_v11  ;;  %v1767_v11 = vld [vmem:[%s1935_s5] ss:$0 sm:$0xff] }
 0x9cf   :  { %1413 = vrcp.f32 %v683_v15  ;;  %v696_v5 = vand.u32 2147483648, %v683_v15  ;;  %vm690_vm6 = vweird.f32 %v683_v15  ;;  %v694_v22 = vand.u32 2147483647, %v683_v15 }
 0x9d0   :  { %1415 = vpow2.f32 %v1303_v20 }
 0x9d1   :  { %v697_v23 = vor.u32 1.1754944e-38, %v696_v5  ;;  %vm695_vm8 = vcmp.eq.f32.partialorder %v694_v22, 8.507059e+37 }
 0x9d5   :  { %v1414_v17 = vpop.eup %1413 }
 0x9d6   :  { %v686_v18 = vmul.f32 %v1414_v17, %v683_v15  ;;  %vm691_vm5 = vweird.f32 %v1414_v17  ;;  %v1416_v6 = vpop.eup %1415 }
 0x9d7   :  { %vm692_vm7 = vmor %vm690_vm6, %vm691_vm5  ;;  %v684_v24 = vadd.f32 1.0, %v1416_v6 }
 0x9d8   :  { %v687_v19 = vsub.f32 1.0, %v686_v18 }
 0x9d9   :  { %1417 = vrcp.f32 %v684_v24  ;;  %v711_v33 = vand.u32 2147483648, %v684_v24  ;;  %vm705_vm11 = vweird.f32 %v684_v24  ;;  %v709_v34 = vand.u32 2147483647, %v684_v24 }
 0x9da   :  { %v688_v3 = vmul.f32 %v1414_v17, %v687_v19 }
 0x9db   :  { %v712_v36 = vor.u32 1.1754944e-38, %v711_v33  ;;  %vm710_vm13 = vcmp.eq.f32.partialorder %v709_v34, 8.507059e+37 }
 0x9dc   :  { %v689_v21 = vadd.f32 %v1414_v17, %v688_v3 }
 0x9de   :  { %v693_v7 = vsel %vm692_vm7, %v1414_v17, %v689_v21 }
 0x9df   :  { %v698_v26 = vsel %vm695_vm8, %v697_v23, %v693_v7  ;;  %v1418_v28 = vpop.eup %1417 }
 0x9e0   :  { %v701_v29 = vmul.f32 %v1418_v28, %v684_v24  ;;  %vm706_vm10 = vweird.f32 %v1418_v28  ;;  %v717_v40 = vmul.f32 %v698_v26, %v1694_v46 }
 0x9e1   :  { %vm707_vm12 = vmor %vm705_vm11, %vm706_vm10 }
 0x9e2   :  { %v702_v30 = vsub.f32 1.0, %v701_v29 }
 0x9e4   :  { %v703_v31 = vmul.f32 %v1418_v28, %v702_v30 }
 0x9e6   :  { %v704_v32 = vadd.f32 %v1418_v28, %v703_v31 }
 0x9e8   :  { %v708_v35 = vsel %vm707_vm12, %v1418_v28, %v704_v32 }
 0x9e9   :  { %v713_v38 = vsel %vm710_vm13, %v712_v36, %v708_v35 }
 0x9ea   :  { %v718_v43 = vmul.f32 %v713_v38, %v1699_v51  ;;  %v40_v51 = vld [vmem:[%s1931_s0 + $0x50] sm:$0xff] }
 0x9eb   :  { %1280 = vmatmul.msk.f32.gmra.mxu0 %vm49_vm0, %v40_v51 }
 0x9f3   :  { %1281 = vmatmul.msk.f32.gmra.mxu0 %vm49_vm0, %v41_v55 }
 0x9fb   :  { %1282 = vmatmul.msk.f32.gmra.mxu0 %vm49_vm0, %v42_v54 }
 0xa1e   :  { %v722_v25 = vpop.permute.xlu2 %721 }
 0xa1f   :  { %v727_v27 = vmul.f32 %v722_v25, %v698_v26 }
 0xa21   :  { %731 = vrot.lane.b32.xlu1 %v727_v27, %s1474_s20 }
 0xa3e   :  { %v724_v37 = vpop.permute.xlu0 %723 }
 0xa3f   :  { %v728_v39 = vmul.f32 %v724_v37, %v713_v38 }
 0xa41   :  { %733 = vrot.lane.b32.xlu2 %v728_v39, %s1474_s20 }
 0xa68   :  { %v145_v63 = vpop.f32.mrf.mxu0 }
 0xa69   :  { %v146_v0 = vadd.f32 %v1593_v16, %v145_v63  ;;  %v1113_v63 = vld [vmem:[#allocation3] sm:$0xff] }
 0xa70   :  { %v148_v4 = vpop.f32.mrf.mxu0 }
 0xa71   :  { %v149_v8 = vadd.f32 %v1593_v16, %v148_v4  ;;  %v1117_v4 = vld [vmem:[#allocation3 + $0x20] sm:$0xff] }
 0xa93   :  { %v732_v41 = vpop.permute.xlu1 %731 }
 0xa94   :  { %v1724_v42 = vadd.f32 %v732_v41, %v717_v40 }
 0xa96   :  { %1419 = vtanh.f32 %v1724_v42 }
 0xa9b   :  { %v734_v44 = vpop.permute.xlu2 %733 }
 0xa9c   :  { %v1420_v45 = vpop.eup %1419  ;;  %v1728_v47 = vadd.f32 %v734_v44, %v718_v43 }
 0xa9d   :  { %743 = vrot.lane.b32.xlu0 %v1420_v45, %s1473_s19 }
 0xa9e   :  { %1421 = vtanh.f32 %v1728_v47 }
 0xaa4   :  { %v1422_v48 = vpop.eup %1421 }
 0xaa5   :  { %745 = vrot.lane.b32.xlu1 %v1422_v48, %s1473_s19 }
 0xb0f   :  { %v744_v49 = vpop.permute.xlu0 %743 }
 0xb10   :  { %v749_v46 = vmul.f32 %v744_v49, %v698_v26 }
 0xb12   :  { %753 = vrot.lane.b32.xlu2 %v749_v46, %s1474_s20 }
 0xb17   :  { %v746_v52 = vpop.permute.xlu1 %745 }
 0xb18   :  { %v750_v53 = vmul.f32 %v746_v52, %v713_v38 }
 0xb1a   :  { %755 = vrot.lane.b32.xlu0 %v750_v53, %s1474_s20 }
 0xb6c   :  { %v754_v50 = vpop.permute.xlu2 %753 }
 0xb6d   :  { %760 = vst.msk [vmem:[#allocation3 + $0x40] sm:$0xff] %vm181_vm9, %v754_v50  ;;  %1304 = vmatmul.msk.f32.vlgmr.msrb.gmra.mxu3 %vm181_vm9, %v754_v50 }
 0xb74   :  { %v1121_v61 = vld [vmem:[#allocation3 + $0x40] sm:$0xff] }
 0xb8c   :  { %v756_v59 = vpop.permute.xlu0 %755 }
 0xb8d   :  { %761 = vst.msk [vmem:[#allocation3 + $0x48] sm:$0xff] %vm181_vm9, %v756_v59  ;;  %1305 = vmatmul.msk.f32.gmra.mxu3 %vm181_vm9, %v756_v59 }
 0xb94   :  { %v1122_v58 = vld [vmem:[#allocation3 + $0x48] sm:$0xff] }
 0xb95   :  { %1324 = vmatmul.msk.f32.vlgmr.msra.gmra.mxu3 %vm181_vm9, %v1121_v61 }
 0xb9d   :  { %1325 = vmatmul.msk.f32.gmra.mxu3 %vm181_vm9, %v1122_v58 }
 0xbf0   :  { %v786_v62 = vpop.f32.mrf.mxu3 }
 0xbf1   :  { %v792_v1 = vadd.f32 %v786_v62, %v146_v0  ;;  %v1114_v62 = vld [vmem:[#allocation3 + $0x8] sm:$0xff] }
 0xbf3   :  { %1423 = vtanh.f32 %v792_v1  ;;  %v1306_v20 = vmul.f32 -1.442695, %v792_v1  ;;  %v1115_v1 = vld [vmem:[#allocation3 + $0x10] sm:$0xff] }
 0xbf9   :  { %v1424_v2 = vpop.eup %1423 }
 0xbfa   :  { %838 = vrot.lane.b32.xlu1 %v1424_v2, %s1473_s19  ;;  %v1116_v2 = vld [vmem:[#allocation3 + $0x18] sm:$0xff] }
 0xc10   :  { %v789_v9 = vpop.f32.mrf.mxu3 }
 0xc11   :  { %v793_v10 = vadd.f32 %v789_v9, %v149_v8  ;;  %v1118_v8 = vld [vmem:[#allocation3 + $0x28] sm:$0xff]  ;;  %v1119_v9 = vld [vmem:[#allocation3 + $0x30] sm:$0xff] }
 0xc13   :  { %1425 = vtanh.f32 %v793_v10  ;;  %v1307_v3 = vmul.f32 -1.442695, %v793_v10  ;;  %v1120_v10 = vld [vmem:[#allocation3 + $0x38] sm:$0xff] }
 0xc14   :  { %1427 = vpow2.f32 %v1306_v20 }
 0xc15   :  { %1429 = vpow2.f32 %v1307_v3 }
 0xc18   :  { %v1226_v15 = vpop.f32.mrf.mxu3 }
 0xc19   :  { %v1426_v17 = vpop.eup %1425  ;;  %v1227_v18 = vadd.f32 %v1767_v11, %v1226_v15  ;;  %v151_v15 = vpop.f32.mrf.mxu0 }
 0xc1a   :  { %840 = vrot.lane.b32.xlu2 %v1426_v17, %s1473_s19  ;;  %v1428_v21 = vpop.eup %1427  ;;  %v1815_v17 = vld [vmem:[%s1933_s3] ss:$0 sm:$0xff] }
 0xc1b   :  { %1258 = vst.msk [vmem:[%s1936_s6 + $0x40] sm:$0xff] %vm49_vm0, %v1227_v18  ;;  %v800_v5 = vadd.f32 1.0, %v1428_v21  ;;  %v1430_v22 = vpop.eup %1429  ;;  %v152_v18 = vadd.f32 %v1815_v17, %v151_v15  ;;  %v155_v20 = vadd.f32 %v1815_v17, %v1584_v12 }
 0xc1c   :  { %v801_v6 = vadd.f32 1.0, %v1430_v22 }
 0xc1d   :  { %1431 = vrcp.f32 %v800_v5  ;;  %v813_v30 = vand.u32 2147483648, %v800_v5  ;;  %vm807_vm15 = vweird.f32 %v800_v5  ;;  %v811_v31 = vand.u32 2147483647, %v800_v5 }
 0xc1e   :  { %1433 = vrcp.f32 %v801_v6  ;;  %v828_v39 = vand.u32 2147483648, %v801_v6  ;;  %vm822_vm4 = vweird.f32 %v801_v6  ;;  %v826_v40 = vand.u32 2147483647, %v801_v6 }
 0xc1f   :  { %v814_v34 = vor.u32 1.1754944e-38, %v813_v30  ;;  %vm812_vm2 = vcmp.eq.f32.partialorder %v811_v31, 8.507059e+37 }
 0xc20   :  { %v1229_v16 = vpop.f32.mrf.mxu3  ;;  %v829_v43 = vor.u32 1.1754944e-38, %v828_v39  ;;  %vm827_vm6 = vcmp.eq.f32.partialorder %v826_v40, 8.507059e+37 }
 0xc21   :  { %v1230_v19 = vadd.f32 %v1767_v11, %v1229_v16 }
 0xc23   :  { %1259 = vst.msk [vmem:[%s1936_s6 + $0x48] sm:$0xff] %vm49_vm0, %v1230_v19  ;;  %v1432_v7 = vpop.eup %1431 }
 0xc24   :  { %v803_v23 = vmul.f32 %v1432_v7, %v800_v5  ;;  %v1434_v25 = vpop.eup %1433  ;;  %vm808_vm14 = vweird.f32 %v1432_v7 }
 0xc25   :  { %v818_v27 = vmul.f32 %v1434_v25, %v801_v6  ;;  %vm809_vm1 = vmor %vm807_vm15, %vm808_vm14  ;;  %vm823_vm3 = vweird.f32 %v1434_v25 }
 0xc26   :  { %v804_v24 = vsub.f32 1.0, %v803_v23  ;;  %vm824_vm5 = vmor %vm822_vm4, %vm823_vm3 }
 0xc27   :  { %v819_v29 = vsub.f32 1.0, %v818_v27 }
 0xc28   :  { %v805_v26 = vmul.f32 %v1432_v7, %v804_v24 }
 0xc29   :  { %v820_v33 = vmul.f32 %v1434_v25, %v819_v29 }
 0xc2a   :  { %v806_v28 = vadd.f32 %v1432_v7, %v805_v26 }
 0xc2b   :  { %v821_v38 = vadd.f32 %v1434_v25, %v820_v33 }
 0xc2c   :  { %v810_v32 = vsel %vm809_vm1, %v1432_v7, %v806_v28 }
 0xc2d   :  { %v815_v35 = vsel %vm812_vm2, %v814_v34, %v810_v32  ;;  %v825_v41 = vsel %vm824_vm5, %v1434_v25, %v821_v38 }
 0xc2e   :  { %v830_v45 = vsel %vm827_vm6, %v829_v43, %v825_v41  ;;  %v834_v49 = vmul.f32 %v815_v35, %v1724_v42 }
 0xc2f   :  { %v835_v53 = vmul.f32 %v830_v45, %v1728_v47 }
 0xc6c   :  { %v839_v36 = vpop.permute.xlu1 %838 }
 0xc6d   :  { %v844_v37 = vmul.f32 %v839_v36, %v815_v35 }
 0xc6f   :  { %848 = vrot.lane.b32.xlu0 %v844_v37, %s1474_s20 }
 0xc74   :  { %v841_v44 = vpop.permute.xlu2 %840 }
 0xc75   :  { %v845_v48 = vmul.f32 %v841_v44, %v830_v45 }
 0xc77   :  { %850 = vrot.lane.b32.xlu1 %v845_v48, %s1474_s20 }
 0xce1   :  { %v849_v46 = vpop.permute.xlu0 %848 }
 0xce2   :  { %v1783_v52 = vadd.f32 %v849_v46, %v834_v49 }
 0xce4   :  { %1435 = vtanh.f32 %v1783_v52 }
 0xce9   :  { %v851_v51 = vpop.permute.xlu1 %850 }
 0xcea   :  { %v1436_v50 = vpop.eup %1435  ;;  %v1787_v56 = vadd.f32 %v851_v51, %v835_v53 }
 0xceb   :  { %860 = vrot.lane.b32.xlu2 %v1436_v50, %s1473_s19 }
 0xcec   :  { %1437 = vtanh.f32 %v1787_v56 }
 0xcf2   :  { %v1438_v57 = vpop.eup %1437 }
 0xcf3   :  { %862 = vrot.lane.b32.xlu0 %v1438_v57, %s1473_s19 }
 0xd45   :  { %v861_v55 = vpop.permute.xlu2 %860 }
 0xd46   :  { %v866_v42 = vmul.f32 %v861_v55, %v815_v35 }
 0xd48   :  { %870 = vrot.lane.b32.xlu1 %v866_v42, %s1474_s20 }
 0xd65   :  { %v863_v47 = vpop.permute.xlu0 %862 }
 0xd66   :  { %v867_v60 = vmul.f32 %v863_v47, %v830_v45 }
 0xd68   :  { %872 = vrot.lane.b32.xlu2 %v867_v60, %s1474_s20 }
 0xdba   :  { %v871_v59 = vpop.permute.xlu1 %870 }
 0xdbb   :  { %877 = vst.msk [vmem:[#allocation3 + $0x50] sm:$0xff] %vm181_vm9, %v871_v59  ;;  %1308 = vmatmul.msk.f32.vlgmr.msrb.gmra.mxu1 %vm181_vm9, %v871_v59 }
 0xdc2   :  { %v873_v61 = vpop.permute.xlu2 %872  ;;  %v1123_v58 = vld [vmem:[#allocation3 + $0x50] sm:$0xff] }
 0xdc3   :  { %878 = vst.msk [vmem:[#allocation3 + $0x58] sm:$0xff] %vm181_vm9, %v873_v61  ;;  %1309 = vmatmul.msk.f32.gmra.mxu1 %vm181_vm9, %v873_v61  ;;  %1326 = vmatmul.msk.f32.gmra.mxu3 %vm181_vm9, %v1123_v58 }
 0xdca   :  { %v1124_v0 = vld [vmem:[#allocation3 + $0x58] sm:$0xff] }
 0xdcb   :  { %1316 = vmatmul.msk.f32.vlgmr.msra.gmra.mxu1 %vm181_vm9, %v1113_v63  ;;  %1327 = vmatmul.msk.f32.gmra.mxu3 %vm181_vm9, %v1124_v0 }
 0xdd3   :  { %1317 = vmatmul.msk.f32.gmra.mxu1 %vm181_vm9, %v1114_v62 }
 0xddb   :  { %1318 = vmatmul.msk.f32.gmra.mxu1 %vm181_vm9, %v1115_v1 }
 0xde3   :  { %1319 = vmatmul.msk.f32.gmra.mxu1 %vm181_vm9, %v1116_v2 }
 0xdeb   :  { %1320 = vmatmul.msk.f32.gmra.mxu1 %vm181_vm9, %v1117_v4 }
 0xdf3   :  { %1321 = vmatmul.msk.f32.gmra.mxu1 %vm181_vm9, %v1118_v8 }
 0xdfb   :  { %1322 = vmatmul.msk.f32.gmra.mxu1 %vm181_vm9, %v1119_v9 }
 0xe03   :  { %1323 = vmatmul.msk.f32.gmra.mxu1 %vm181_vm9, %v1120_v10 }
 0xe38   :  { %v903_v16 = vpop.f32.mrf.mxu1 }
 0xe39   :  { %v909_v19 = vadd.f32 %v903_v16, %v152_v18 }
 0xe3b   :  { %1439 = vtanh.f32 %v909_v19  ;;  %v1310_v40 = vmul.f32 -1.442695, %v909_v19 }
 0xe40   :  { %v906_v3 = vpop.f32.mrf.mxu1 }
 0xe41   :  { %v1440_v21 = vpop.eup %1439  ;;  %v910_v5 = vadd.f32 %v906_v3, %v155_v20 }
 0xe42   :  { %955 = vrot.lane.b32.xlu0 %v1440_v21, %s1473_s19 }
 0xe43   :  { %1441 = vtanh.f32 %v910_v5  ;;  %v1311_v41 = vmul.f32 -1.442695, %v910_v5 }
 0xe44   :  { %1443 = vpow2.f32 %v1310_v40 }
 0xe45   :  { %1445 = vpow2.f32 %v1311_v41 }
 0xe46   :  { %v1232_v22 = vpop.f32.mrf.mxu3 }
 0xe47   :  { %v1233_v6 = vadd.f32 %v1767_v11, %v1232_v22 }
 0xe48   :  { %v1202_v7 = vpop.f32.mrf.mxu1 }
 0xe49   :  { %v1442_v23 = vpop.eup %1441  ;;  %1260 = vst.msk [vmem:[%s1936_s6 + $0x50] sm:$0xff] %vm49_vm0, %v1233_v6  ;;  %v1203_v24 = vadd.f32 %v1767_v11, %v1202_v7 }
 0xe4a   :  { %957 = vrot.lane.b32.xlu1 %v1442_v23, %s1473_s19  ;;  %v1444_v43 = vpop.eup %1443 }
 0xe4b   :  { %1250 = vst.msk [vmem:[%s1936_s6] sm:$0xff] %vm49_vm0, %v1203_v24  ;;  %v917_v44 = vadd.f32 1.0, %v1444_v43  ;;  %v1446_v45 = vpop.eup %1445 }
 0xe4c   :  { %v918_v48 = vadd.f32 1.0, %v1446_v45 }
 0xe4d   :  { %1447 = vrcp.f32 %v917_v44  ;;  %v930_v54 = vand.u32 2147483648, %v917_v44  ;;  %vm924_vm8 = vweird.f32 %v917_v44  ;;  %v928_v47 = vand.u32 2147483647, %v917_v44 }
 0xe4e   :  { %v1235_v12 = vpop.f32.mrf.mxu3  ;;  %1449 = vrcp.f32 %v918_v48  ;;  %v945_v1 = vand.u32 2147483648, %v918_v48  ;;  %vm939_vm13 = vweird.f32 %v918_v48  ;;  %v943_v2 = vand.u32 2147483647, %v918_v48 }
 0xe4f   :  { %v1236_v25 = vadd.f32 %v1767_v11, %v1235_v12  ;;  %v931_v61 = vor.u32 1.1754944e-38, %v930_v54  ;;  %vm929_vm11 = vcmp.eq.f32.partialorder %v928_v47, 8.507059e+37 }
 0xe50   :  { %v1205_v26 = vpop.f32.mrf.mxu1  ;;  %v946_v8 = vor.u32 1.1754944e-38, %v945_v1  ;;  %vm944_vm15 = vcmp.eq.f32.partialorder %v943_v2, 8.507059e+37 }
 0xe51   :  { %1261 = vst.msk [vmem:[%s1936_s6 + $0x58] sm:$0xff] %vm49_vm0, %v1236_v25  ;;  %v1206_v27 = vadd.f32 %v1767_v11, %v1205_v26  ;;  %v158_v26 = vadd.f32 %v1815_v17, %v1586_v13 }
 0xe53   :  { %1251 = vst.msk [vmem:[%s1936_s6 + $0x8] sm:$0xff] %vm49_vm0, %v1206_v27  ;;  %v1448_v49 = vpop.eup %1447 }
 0xe54   :  { %v920_v46 = vmul.f32 %v1448_v49, %v917_v44  ;;  %v1450_v51 = vpop.eup %1449  ;;  %vm925_vm7 = vweird.f32 %v1448_v49 }
 0xe55   :  { %v935_v57 = vmul.f32 %v1450_v51, %v918_v48  ;;  %vm926_vm10 = vmor %vm924_vm8, %vm925_vm7  ;;  %vm940_vm12 = vweird.f32 %v1450_v51 }
 0xe56   :  { %v921_v53 = vsub.f32 1.0, %v920_v46  ;;  %vm941_vm14 = vmor %vm939_vm13, %vm940_vm12 }
 0xe57   :  { %v936_v42 = vsub.f32 1.0, %v935_v57 }
 0xe58   :  { %v1208_v28 = vpop.f32.mrf.mxu1  ;;  %v922_v50 = vmul.f32 %v1448_v49, %v921_v53 }
 0xe59   :  { %v1209_v29 = vadd.f32 %v1767_v11, %v1208_v28  ;;  %v937_v59 = vmul.f32 %v1450_v51, %v936_v42 }
 0xe5a   :  { %v923_v55 = vadd.f32 %v1448_v49, %v922_v50 }
 0xe5b   :  { %1252 = vst.msk [vmem:[%s1936_s6 + $0x10] sm:$0xff] %vm49_vm0, %v1209_v29  ;;  %v938_v62 = vadd.f32 %v1450_v51, %v937_v59  ;;  %v161_v29 = vadd.f32 %v1815_v17, %v1588_v14 }
 0xe5c   :  { %v927_v60 = vsel %vm926_vm10, %v1448_v49, %v923_v55 }
 0xe5d   :  { %v932_v63 = vsel %vm929_vm11, %v931_v61, %v927_v60  ;;  %v942_v4 = vsel %vm941_vm14, %v1450_v51, %v938_v62 }
 0xe5e   :  { %v947_v10 = vsel %vm944_vm15, %v946_v8, %v942_v4  ;;  %v951_v18 = vmul.f32 %v932_v63, %v1783_v52 }
 0xe5f   :  { %v952_v3 = vmul.f32 %v947_v10, %v1787_v56 }
 0xe60   :  { %v1211_v30 = vpop.f32.mrf.mxu1 }
 0xe61   :  { %v1212_v31 = vadd.f32 %v1767_v11, %v1211_v30 }
 0xe63   :  { %1253 = vst.msk [vmem:[%s1936_s6 + $0x18] sm:$0xff] %vm49_vm0, %v1212_v31 }
 0xe68   :  { %v1214_v32 = vpop.f32.mrf.mxu1 }
 0xe69   :  { %v1215_v33 = vadd.f32 %v1767_v11, %v1214_v32 }
 0xe6b   :  { %1254 = vst.msk [vmem:[%s1936_s6 + $0x20] sm:$0xff] %vm49_vm0, %v1215_v33 }
 0xe70   :  { %v1217_v34 = vpop.f32.mrf.mxu1 }
 0xe71   :  { %v1218_v35 = vadd.f32 %v1767_v11, %v1217_v34 }
 0xe73   :  { %1255 = vst.msk [vmem:[%s1936_s6 + $0x28] sm:$0xff] %vm49_vm0, %v1218_v35 }
 0xe78   :  { %v1220_v36 = vpop.f32.mrf.mxu1 }
 0xe79   :  { %v1221_v37 = vadd.f32 %v1767_v11, %v1220_v36 }
 0xe7b   :  { %1256 = vst.msk [vmem:[%s1936_s6 + $0x30] sm:$0xff] %vm49_vm0, %v1221_v37 }
 0xe80   :  { %v1223_v38 = vpop.f32.mrf.mxu1 }
 0xe81   :  { %v1224_v39 = vadd.f32 %v1767_v11, %v1223_v38 }
 0xe83   :  { %1257 = vst.msk [vmem:[%s1936_s6 + $0x38] sm:$0xff] %vm49_vm0, %v1224_v39 }
 0xeb4   :  { %v956_v58 = vpop.permute.xlu0 %955 }
 0xeb5   :  { %v961_v0 = vmul.f32 %v956_v58, %v932_v63 }
 0xeb7   :  { %965 = vrot.lane.b32.xlu2 %v961_v0, %s1474_s20 }
 0xebc   :  { %v958_v9 = vpop.permute.xlu1 %957 }
 0xebd   :  { %v962_v15 = vmul.f32 %v958_v9, %v947_v10 }
 0xebf   :  { %967 = vrot.lane.b32.xlu0 %v962_v15, %s1474_s20 }
 0xf11   :  { %v966_v16 = vpop.permute.xlu2 %965 }
 0xf12   :  { %v1875_v19 = vadd.f32 %v966_v16, %v951_v18 }
 0xf14   :  { %1451 = vtanh.f32 %v1875_v19 }
 0xf1a   :  { %v1452_v20 = vpop.eup %1451 }
 0xf1b   :  { %977 = vrot.lane.b32.xlu1 %v1452_v20, %s1473_s19 }
 0xf31   :  { %v968_v21 = vpop.permute.xlu0 %967 }
 0xf32   :  { %v1880_v5 = vadd.f32 %v968_v21, %v952_v3 }
 0xf34   :  { %1453 = vtanh.f32 %v1880_v5 }
 0xf3a   :  { %v1454_v22 = vpop.eup %1453 }
 0xf3b   :  { %979 = vrot.lane.b32.xlu2 %v1454_v22, %s1473_s19 }
 0xf8d   :  { %v978_v6 = vpop.permute.xlu1 %977 }
 0xf8e   :  { %v983_v52 = vmul.f32 %v978_v6, %v932_v63 }
 0xf90   :  { %987 = vrot.lane.b32.xlu0 %v983_v52, %s1474_s20 }
 0xf95   :  { %v980_v7 = vpop.permute.xlu2 %979 }
 0xf96   :  { %v984_v23 = vmul.f32 %v980_v7, %v947_v10 }
 0xf98   :  { %989 = vrot.lane.b32.xlu1 %v984_v23, %s1474_s20 }
0x1002   :  { %v988_v24 = vpop.permute.xlu0 %987 }
0x1003   :  { %994 = vst.msk [vmem:[#allocation3 + $0x60] sm:$0xff] %vm181_vm9, %v988_v24  ;;  %1312 = vmatmul.msk.f32.vlgmr.msra.gmra.mxu2 %vm181_vm9, %v988_v24 }
0x100a   :  { %v990_v56 = vpop.permute.xlu1 %989  ;;  %v1125_v12 = vld [vmem:[#allocation3 + $0x60] sm:$0xff] }
0x100b   :  { %995 = vst.msk [vmem:[#allocation3 + $0x68] sm:$0xff] %vm181_vm9, %v990_v56  ;;  %1313 = vmatmul.msk.f32.gmra.mxu2 %vm181_vm9, %v990_v56  ;;  %1328 = vmatmul.msk.f32.gmra.mxu3 %vm181_vm9, %v1125_v12 }
0x1012   :  { %v1126_v25 = vld [vmem:[#allocation3 + $0x68] sm:$0xff] }
0x1013   :  { %1329 = vmatmul.msk.f32.gmra.mxu3 %vm181_vm9, %v1126_v25 }
0x1086   :  { %v1020_v27 = vpop.f32.mrf.mxu2 }
0x1087   :  { %v1026_v28 = vadd.f32 %v1020_v27, %v158_v26 }
0x1089   :  { %1455 = vtanh.f32 %v1026_v28  ;;  %v1314_v14 = vmul.f32 -1.442695, %v1026_v28 }
0x108e   :  { %v1023_v30 = vpop.f32.mrf.mxu2  ;;  %v1238_v31 = vpop.f32.mrf.mxu3 }
0x108f   :  { %v1456_v32 = vpop.eup %1455  ;;  %v1027_v33 = vadd.f32 %v1023_v30, %v161_v29  ;;  %v1239_v34 = vadd.f32 %v1767_v11, %v1238_v31 }
0x1090   :  { %1072 = vrot.lane.b32.xlu2 %v1456_v32, %s1473_s19 }
0x1091   :  { %1457 = vtanh.f32 %v1027_v33  ;;  %1262 = vst.msk [vmem:[%s1936_s6 + $0x60] sm:$0xff] %vm49_vm0, %v1239_v34  ;;  %v1315_v41 = vmul.f32 -1.442695, %v1027_v33 }
0x1092   :  { %1459 = vpow2.f32 %v1314_v14 }
0x1096   :  { %v1241_v13 = vpop.f32.mrf.mxu3 }
0x1097   :  { %v1458_v35 = vpop.eup %1457  ;;  %v1242_v36 = vadd.f32 %v1767_v11, %v1241_v13 }
0x1098   :  { %1074 = vrot.lane.b32.xlu0 %v1458_v35, %s1473_s19  ;;  %v1460_v17 = vpop.eup %1459 }
0x1099   :  { %1263 = vst.msk [vmem:[%s1936_s6 + $0x68] sm:$0xff] %vm49_vm0, %v1242_v36  ;;  %v1034_v37 = vadd.f32 1.0, %v1460_v17 }
0x109b   :  { %1461 = vrcp.f32 %v1034_v37  ;;  %v1047_v45 = vand.u32 2147483648, %v1034_v37  ;;  %vm1041_vm2 = vweird.f32 %v1034_v37  ;;  %v1045_v48 = vand.u32 2147483647, %v1034_v37 }
0x109c   :  { %1463 = vpow2.f32 %v1315_v41 }
0x109d   :  { %v1048_v53 = vor.u32 1.1754944e-38, %v1047_v45  ;;  %vm1046_vm4 = vcmp.eq.f32.partialorder %v1045_v48, 8.507059e+37 }
0x10a1   :  { %v1462_v38 = vpop.eup %1461 }
0x10a2   :  { %v1037_v39 = vmul.f32 %v1462_v38, %v1034_v37  ;;  %vm1042_vm1 = vweird.f32 %v1462_v38  ;;  %v1464_v49 = vpop.eup %1463 }
0x10a3   :  { %vm1043_vm3 = vmor %vm1041_vm2, %vm1042_vm1  ;;  %v1035_v51 = vadd.f32 1.0, %v1464_v49 }
0x10a4   :  { %v1038_v40 = vsub.f32 1.0, %v1037_v39 }
0x10a5   :  { %1465 = vrcp.f32 %v1035_v51  ;;  %v1062_v61 = vand.u32 2147483648, %v1035_v51  ;;  %vm1056_vm6 = vweird.f32 %v1035_v51  ;;  %v1060_v58 = vand.u32 2147483647, %v1035_v51 }
0x10a6   :  { %v1039_v43 = vmul.f32 %v1462_v38, %v1038_v40 }
0x10a7   :  { %v1063_v0 = vor.u32 1.1754944e-38, %v1062_v61  ;;  %vm1061_vm8 = vcmp.eq.f32.partialorder %v1060_v58, 8.507059e+37 }
0x10a8   :  { %v1040_v44 = vadd.f32 %v1462_v38, %v1039_v43 }
0x10aa   :  { %v1044_v46 = vsel %vm1043_vm3, %v1462_v38, %v1040_v44 }
0x10ab   :  { %v1049_v50 = vsel %vm1046_vm4, %v1048_v53, %v1044_v46  ;;  %v1466_v42 = vpop.eup %1465 }
0x10ac   :  { %v1052_v54 = vmul.f32 %v1466_v42, %v1035_v51  ;;  %vm1057_vm5 = vweird.f32 %v1466_v42  ;;  %v1068_v4 = vmul.f32 %v1049_v50, %v1875_v19 }
0x10ad   :  { %vm1058_vm7 = vmor %vm1056_vm6, %vm1057_vm5 }
0x10ae   :  { %v1053_v47 = vsub.f32 1.0, %v1052_v54 }
0x10b0   :  { %v1054_v60 = vmul.f32 %v1466_v42, %v1053_v47 }
0x10b2   :  { %v1055_v59 = vadd.f32 %v1466_v42, %v1054_v60 }
0x10b4   :  { %v1059_v63 = vsel %vm1058_vm7, %v1466_v42, %v1055_v59 }
0x10b5   :  { %v1064_v1 = vsel %vm1061_vm8, %v1063_v0, %v1059_v63 }
0x10b6   :  { %v1069_v10 = vmul.f32 %v1064_v1, %v1880_v5 }
0x10ea   :  { %v1073_v57 = vpop.permute.xlu2 %1072 }
0x10eb   :  { %v1078_v55 = vmul.f32 %v1073_v57, %v1049_v50 }
0x10ed   :  { %1082 = vrot.lane.b32.xlu1 %v1078_v55, %s1474_s20 }
0x110a   :  { %v1075_v62 = vpop.permute.xlu0 %1074 }
0x110b   :  { %v1079_v2 = vmul.f32 %v1075_v62, %v1064_v1 }
0x110d   :  { %1084 = vrot.lane.b32.xlu2 %v1079_v2, %s1474_s20 }
0x115f   :  { %v1083_v8 = vpop.permute.xlu1 %1082 }
0x1160   :  { %v1088_v9 = vadd.f32 %v1083_v8, %v1068_v4 }
0x1162   :  { %1467 = vtanh.f32 %v1088_v9 }
0x1167   :  { %v1085_v15 = vpop.permute.xlu2 %1084 }
0x1168   :  { %v1468_v18 = vpop.eup %1467  ;;  %v1089_v16 = vadd.f32 %v1085_v15, %v1069_v10 }
0x1169   :  { %1094 = vrot.lane.b32.xlu0 %v1468_v18, %s1473_s19 }
0x116a   :  { %1469 = vtanh.f32 %v1089_v16 }
0x1170   :  { %v1470_v20 = vpop.eup %1469 }
0x1171   :  { %1096 = vrot.lane.b32.xlu1 %v1470_v20, %s1473_s19 }
0x11db   :  { %v1095_v3 = vpop.permute.xlu0 %1094 }
0x11dc   :  { %v1100_v21 = vmul.f32 %v1095_v3, %v1049_v50 }
0x11de   :  { %1104 = vrot.lane.b32.xlu2 %v1100_v21, %s1474_s20 }
0x11e3   :  { %v1097_v22 = vpop.permute.xlu1 %1096 }
0x11e4   :  { %v1101_v19 = vmul.f32 %v1097_v22, %v1064_v1 }
0x11e6   :  { %1106 = vrot.lane.b32.xlu0 %v1101_v19, %s1474_s20 }
0x1238   :  { %v1105_v6 = vpop.permute.xlu2 %1104 }
0x1239   :  { %1111 = vst.msk [vmem:[#allocation3 + $0x70] sm:$0xff] %vm181_vm9, %v1105_v6 }
0x1240   :  { %v1127_v5 = vld [vmem:[#allocation3 + $0x70] sm:$0xff] }
0x1241   :  { %1330 = vmatmul.msk.f32.gmra.mxu3 %vm181_vm9, %v1127_v5 }
0x1258   :  { %v1107_v52 = vpop.permute.xlu0 %1106 }
0x1259   :  { %1112 = vst.msk [vmem:[#allocation3 + $0x78] sm:$0xff] %vm181_vm9, %v1107_v52 }
0x1260   :  { %v1128_v7 = vld [vmem:[#allocation3 + $0x78] sm:$0xff] }
0x1261   :  { %1331 = vmatmul.msk.f32.gmra.mxu3 %vm181_vm9, %v1128_v7 }
0x12c4   :  { %v1244_v23 = vpop.f32.mrf.mxu3 }
0x12c5   :  { %v1245_v24 = vadd.f32 %v1767_v11, %v1244_v23 }
0x12c7   :  { %1264 = vst.msk [vmem:[%s1936_s6 + $0x70] sm:$0xff] %vm49_vm0, %v1245_v24 }
0x12e4   :  { %v1247_v56 = vpop.f32.mrf.mxu3 }
0x12e5   :  { %v1248_v12 = vadd.f32 %v1767_v11, %v1247_v56 }
0x12e7   :  { %1265 = vst.msk [vmem:[%s1936_s6 + $0x78] sm:$0xff] %vm49_vm0, %v1248_v12 }

</bundles_post_ra>
